<compile_context>
chip_gen: v7x
topology: tpu7x:2x2x1
jax: 0.10.0
libtpu: 0.0.40
codegen_flags: <defaults>
</compile_context>

<pallas_src>
import functools

import numpy as np
import jax
import jax.numpy as jnp
from jax.experimental import pallas as pl
from jax.experimental.pallas import tpu as pltpu

# --- "conf" values implied by the module -------------------------------------
FILTERS = 256            # conf.FILTERS (heads hard-code 256 input channels)
BLOCKS = 2               # conf.BLOCKS (small for the demo)
H = W = 4                # board spatial size
MAXIMUM_ACTION = H * W   # conf.MAXIMUM_ACTION: Flatten gives C*H*W = C*MAXIMUM_ACTION
BATCH = 2
EPS = 1e-5               # nn.BatchNorm2d default eps
CPAD = 16                # merged head-conv channels (4 value + 8 policy + 4 pad)


# ------------------------------ Pallas kernel --------------------------------
def _resnet_kernel(*refs, num_blocks, batch, height, width):
    """Whole-network forward: stem -> residual blocks -> value/policy heads."""
    it = iter(refs)
    x_ref, ws_ref, bs_ref, m3_ref = next(it), next(it), next(it), next(it)
    block_refs = [tuple(next(it) for _ in range(6)) for _ in range(num_blocks)]
    vp_w, vp_b, sel_ref, r_ref, fc_w, fc_b, vf2_w, vf2_b = (next(it) for _ in range(8))
    policy_ref, value_ref = next(it), next(it)

    f32, bf16 = jnp.float32, jnp.bfloat16
    m = batch * height * width            # number of tokens

    def mm(a, b):  # MXU matmul with f32 accumulation
        return jnp.dot(a, b, preferred_element_type=f32)

    # stem: Conv2d(3, FILTERS, k=3, pad=1) on the pre-im2col'd input [M, 32]
    x = mm(x_ref[...], ws_ref[...]) + bs_ref[...]                       # [M, FILTERS] f32

    # residual bottleneck blocks (BN + bias folded into the conv weights)
    for (w1, b1, w2, b2, w3, b3) in block_refs:
        inp = x
        h = jnp.maximum(mm(x.astype(bf16), w1[...]) + b1[...], 0.0)     # 1x1: 4D -> D
        # 3x3 conv: build the im2col tile in-register with roll + boundary mask,
        # then one fused K = 9*D matmul against the stacked per-tap weights.
        taps = []
        for t in range(9):
            off = (t // 3 - 1) * width + (t % 3 - 1)   # row offset of tap (kh, kw)
            if off == 0:
                taps.append(h)                                           # centre tap
            else:
                rolled = pltpu.roll(h, shift=(-off) % m, axis=0)         # XLU rotate
                taps.append(rolled * m3_ref[t])                          # zero OOB rows
        him = jnp.concatenate(taps, axis=1).astype(bf16)                 # [M, 9*D]
        h = jnp.maximum(mm(him, w2[...]) + b2[...], 0.0)                 # [M, D]
        x = jnp.maximum(mm(h.astype(bf16), w3[...]) + b3[...] + inp, 0.0)  # 1x1: D -> 4D (+res)

    # ---- heads: merged Conv1x1 (tiled HW times along N) -> ReLU ->
    #             flatten via select-mask + pooling matmul ->
    #             [BN folded] fused FC -> {tanh value, softmax policy}
    hp = jnp.maximum(mm(x.astype(bf16), vp_w[...]) + vp_b[...], 0.0)    # [M, HW*CPAD]
    h2 = (hp * sel_ref[...]).astype(bf16)        # keep only lane-block s(m) per row
    flat = mm(r_ref[...], h2)                    # [B, HW*CPAD] == torch NCHW flatten
    out_all = mm(flat.astype(bf16), fc_w[...]) + fc_b[...]              # [B, 64 + A]

    nv = vf2_w.shape[0]                          # 64 hidden units of the value head
    v1 = out_all[:, :nv]
    logits = out_all[:, nv:]

    value_ref[...] = jnp.tanh(mm(v1.astype(bf16), vf2_w[...]) + vf2_b[...])

    mx = jnp.max(logits, axis=-1, keepdims=True)
    e = jnp.exp(logits - mx)
    policy_ref[...] = e / jnp.sum(e, axis=-1, keepdims=True)            # exact softmax


# ------------------------------ trace-time glue --------------------------------
def _bn_scale_shift(bn):
    scale = bn["gamma"] / jnp.sqrt(bn["var"] + EPS)
    shift = bn["beta"] - bn["mean"] * scale
    return scale, shift


def _head_fc_fold(w_fc, b_fc, scale, shift, c, hw):
    """Reorder Linear weight to per-spatial [HW, C, N] (token rows are (b,h,w);
    torch flatten order is (c,h,w)) and fold the preceding BatchNorm affine in."""
    n = w_fc.shape[0]
    w3 = jnp.transpose(w_fc.reshape(n, c, hw), (2, 1, 0))   # w3[s, c, n] = w_fc[n, c*hw + s]
    b = b_fc + jnp.sum(w3 * shift[None, :, None], axis=(0, 1))
    return w3 * scale[None, :, None], b


def _prepare_kernel_args(params, x_nchw):
    nb, cin, hh, ww = x_nchw.shape
    hw = hh * ww
    m = nb * hw
    bf16, f32 = jnp.bfloat16, jnp.float32

    # stem im2col: token rows ordered (b, h, w); patch columns ordered (kh, kw, cin)
    x = jnp.transpose(x_nchw, (0, 2, 3, 1)).astype(f32)                  # NHWC
    xp = jnp.pad(x, ((0, 0), (1, 1), (1, 1), (0, 0)))
    cols = [xp[:, kh:kh + hh, kw:kw + ww, :] for kh in range(3) for kw in range(3)]
    xcol = jnp.concatenate(cols, axis=-1).reshape(m, 9 * cin)
    kpad = (-(9 * cin)) % 8                                              # 27 -> 32
    xcol = jnp.pad(xcol, ((0, 0), (0, kpad)))
    w_stem = jnp.transpose(params["conv1_w"], (2, 3, 1, 0)).reshape(9 * cin, -1)
    w_stem = jnp.pad(w_stem, ((0, kpad), (0, 0)))

    # 3x3 boundary masks: m3[t, row(b,h,w)] = 1 iff the tap's source is in-bounds
    m3 = np.zeros((9, m, 1), np.float32)
    for t in range(9):
        dh, dw = t // 3 - 1, t % 3 - 1
        for b in range(nb):
            for h in range(hh):
                for w in range(ww):
                    if 0 <= h + dh < hh and 0 <= w + dw < ww:
                        m3[t, b * hw + h * ww + w, 0] = 1.0

    args = [xcol.astype(bf16), w_stem.astype(bf16), params["conv1_b"][None, :],
            jnp.asarray(m3)]

    # residual blocks: fold BN (inference form) + bias into every conv
    for bp in params["blocks"]:
        s1, t1 = _bn_scale_shift(bp["bn1"])
        w1 = jnp.transpose(bp["c1_w"][:, :, 0, 0]) * s1[None, :]
        b1 = bp["c1_b"] * s1 + t1
        s2, t2 = _bn_scale_shift(bp["bn2"])
        w2 = jnp.transpose(bp["c2_w"], (2, 3, 1, 0)) * s2[None, None, None, :]
        w2 = w2.reshape(9 * w2.shape[2], w2.shape[3])                    # [9*Cin, Cout]
        b2 = bp["c2_b"] * s2 + t2
        s3, t3 = _bn_scale_shift(bp["bn3"])
        w3 = jnp.transpose(bp["c3_w"][:, :, 0, 0]) * s3[None, :]
        b3 = bp["c3_b"] * s3 + t3
        args += [w1.astype(bf16), b1[None, :], w2.astype(bf16), b2[None, :],
                 w3.astype(bf16), b3[None, :]]

    # ---- heads ----
    cch = params["conv1_w"].shape[0]            # trunk channels (256)
    cv = params["vh_conv_w"].shape[0]           # 4
    cp = params["ph_conv_w"].shape[0]           # 8
    nv = params["vh_fc1_b"].shape[0]            # 64
    na = params["ph_fc_b"].shape[0]             # MAXIMUM_ACTION + 1

    # merged 1x1 head conv, channel-padded to CPAD, tiled HW times along N
    vp_w = jnp.zeros((cch, CPAD), f32)
    vp_w = vp_w.at[:, :cv].set(jnp.transpose(params["vh_conv_w"][:, :, 0, 0]))
    vp_w = vp_w.at[:, cv:cv + cp].set(jnp.transpose(params["ph_conv_w"][:, :, 0, 0]))
    vp_b = jnp.zeros((CPAD,), f32)
    vp_b = vp_b.at[:cv].set(params["vh_conv_b"]).at[cv:cv + cp].set(params["ph_conv_b"])
    vp_w_t = jnp.tile(vp_w, (1, hw))            # [C, HW*CPAD]
    vp_b_t = jnp.tile(vp_b, hw)[None, :]        # [1, HW*CPAD]

    # flatten machinery: per-row spatial-block selection mask + batch pooling matrix
    sel = np.zeros((m, hw * CPAD), np.float32)
    for mi in range(m):
        s = mi % hw
        sel[mi, s * CPAD:(s + 1) * CPAD] = 1.0
    r = np.zeros((nb, m), np.float32)
    for b in range(nb):
        r[b, b * hw:(b + 1) * hw] = 1.0

    # fused head FC: BN folded in, channel-padded rows zero, value|policy concatenated
    sv, tv = _bn_scale_shift(params["vh_bn"])
    w3v, bv = _head_fc_fold(params["vh_fc1_w"], params["vh_fc1_b"], sv, tv, cv, hw)
    sp, tp = _bn_scale_shift(params["ph_bn"])
    w3p, bp_ = _head_fc_fold(params["ph_fc_w"], params["ph_fc_b"], sp, tp, cp, hw)
    fc = jnp.zeros((hw, CPAD, nv + na), f32)
    fc = fc.at[:, :cv, :nv].set(w3v)
    fc = fc.at[:, cv:cv + cp, nv:].set(w3p)
    fc = fc.reshape(hw * CPAD, nv + na)
    fc_b = jnp.concatenate([bv, bp_])[None, :]

    args += [vp_w_t.astype(bf16), vp_b_t, jnp.asarray(sel),
             jnp.asarray(r).astype(bf16), fc.astype(bf16), fc_b,
             params["vh_fc2_w"].T.astype(bf16), params["vh_fc2_b"][None, :]]
    return args


def resnet_forward(params, x_nchw):
    nb, _, hh, ww = x_nchw.shape
    args = _prepare_kernel_args(params, x_nchw)
    n_actions = params["ph_fc_b"].shape[0]

    kern = functools.partial(_resnet_kernel, num_blocks=len(params["blocks"]),
                             batch=nb, height=hh, width=ww)
    vmem = pl.BlockSpec(memory_space=pltpu.MemorySpace.VMEM)
    policy, value = pl.pallas_call(
        kern,
        out_shape=(jax.ShapeDtypeStruct((nb, n_actions), jnp.float32),
                   jax.ShapeDtypeStruct((nb, 1), jnp.float32)),
        in_specs=[vmem] * len(args),
        out_specs=(vmem, vmem),
    )(*args)
    return policy, value


# ------------------------------ pure-JAX reference -----------------------------
def _reference_forward(params, x):
    def conv(x, w, b, pad):
        y = jax.lax.conv_general_dilated(
            x, w, window_strides=(1, 1), padding=[(pad, pad), (pad, pad)],
            dimension_numbers=("NCHW", "OIHW", "NCHW"))
        return y + b[None, :, None, None]

    def bn(x, p):
        s = p["gamma"] / jnp.sqrt(p["var"] + EPS)
        return x * s[None, :, None, None] + (p["beta"] - p["mean"] * s)[None, :, None, None]

    relu = jax.nn.relu
    x = conv(x, params["conv1_w"], params["conv1_b"], 1)
    for bp in params["blocks"]:
        inp = x
        h = relu(bn(conv(x, bp["c1_w"], bp["c1_b"], 0), bp["bn1"]))
        h = relu(bn(conv(h, bp["c2_w"], bp["c2_b"], 1), bp["bn2"]))
        x = relu(bn(conv(h, bp["c3_w"], bp["c3_b"], 0), bp["bn3"]) + inp)

    v = bn(relu(conv(x, params["vh_conv_w"], params["vh_conv_b"], 0)), params["vh_bn"])
    v = v.reshape(v.shape[0], -1)
    v = v @ params["vh_fc1_w"].T + params["vh_fc1_b"]
    v = jnp.tanh(v @ params["vh_fc2_w"].T + params["vh_fc2_b"])

    p = bn(relu(conv(x, params["ph_conv_w"], params["ph_conv_b"], 0)), params["ph_bn"])
    p = p.reshape(p.shape[0], -1)
    p = jax.nn.softmax(p @ params["ph_fc_w"].T + params["ph_fc_b"], axis=1)
    return p, v


# ------------------------------ parameters ------------------------------------
def init_params(key):
    keys = iter(jax.random.split(key, 256))

    def nrm(shape, s=0.05):
        return jax.random.normal(next(keys), shape, jnp.float32) * s

    def bn(n):
        return dict(gamma=1.0 + nrm((n,)), beta=nrm((n,)),
                    mean=nrm((n,)), var=1.0 + jnp.abs(nrm((n,))))

    D = FILTERS // 4
    p = {
        "conv1_w": nrm((FILTERS, 3, 3, 3)), "conv1_b": nrm((FILTERS,)),
        "blocks": [],
        # policy head: Conv2d(256,8,1) -> ReLU -> BN(8) -> Flatten -> Linear -> Softmax
        "ph_conv_w": nrm((8, FILTERS, 1, 1)), "ph_conv_b": nrm((8,)),
        "ph_bn": bn(8),
        "ph_fc_w": nrm((MAXIMUM_ACTION + 1, 8 * MAXIMUM_ACTION)),
        "ph_fc_b": nrm((MAXIMUM_ACTION + 1,)),
        # value head: Conv2d(256,4,1) -> ReLU -> BN(4) -> Flatten -> Linear -> Linear -> Tanh
        "vh_conv_w": nrm((4, FILTERS, 1, 1)), "vh_conv_b": nrm((4,)),
        "vh_bn": bn(4),
        "vh_fc1_w": nrm((64, 4 * MAXIMUM_ACTION)), "vh_fc1_b": nrm((64,)),
        "vh_fc2_w": nrm((1, 64)), "vh_fc2_b": nrm((1,)),
    }
    for _ in range(BLOCKS):
        p["blocks"].append({
            "c1_w": nrm((D, FILTERS, 1, 1)), "c1_b": nrm((D,)), "bn1": bn(D),
            "c2_w": nrm((D, D, 3, 3)),       "c2_b": nrm((D,)), "bn2": bn(D),
            "c3_w": nrm((FILTERS, D, 1, 1)), "c3_b": nrm((FILTERS,)), "bn3": bn(FILTERS),
        })
    return p


# TODO(synk): BatchNorm is implemented in inference (running-stats) mode; a fresh
# torch module defaults to training mode which would use per-batch statistics.

if __name__ == "__main__":
    key = jax.random.PRNGKey(0)
    pkey, xkey = jax.random.split(key)
    params = init_params(pkey)
    x = jax.random.normal(xkey, (BATCH, 3, H, W), jnp.float32)

    policy, value = jax.jit(resnet_forward)(params, x)
    jax.block_until_ready((policy, value))

    ref_p, ref_v = jax.jit(_reference_forward)(params, x)

    assert policy.shape == (BATCH, MAXIMUM_ACTION + 1)
    assert value.shape == (BATCH, 1)
    assert bool(jnp.all(jnp.isfinite(policy))) and bool(jnp.all(jnp.isfinite(value)))
    # softmax rows sum to 1 (exact divide), tanh bounded
    assert bool(jnp.allclose(jnp.sum(policy, axis=1), 1.0, atol=1e-3))
    assert bool(jnp.all(jnp.abs(value) <= 1.0))
    # match the pure-JAX f32 reference (matmuls run with bf16 operands, f32 acc)
    assert bool(jnp.allclose(policy, ref_p, atol=5e-2, rtol=5e-2))
    assert bool(jnp.allclose(value, ref_v, atol=5e-2, rtol=5e-2))
    print("KERNEL_OK")
</pallas_src>

<mosaic_0001>
module attributes {stable_mosaic.version = 11 : i64} {
  func.func @_resnet_kernel(%arg0: memref<32x32xbf16, #tpu.memory_space<vmem>>, %arg1: memref<32x256xbf16, #tpu.memory_space<vmem>>, %arg2: memref<1x256xf32, #tpu.memory_space<vmem>>, %arg3: memref<9x32x1xf32, #tpu.memory_space<vmem>>, %arg4: memref<256x64xbf16, #tpu.memory_space<vmem>>, %arg5: memref<1x64xf32, #tpu.memory_space<vmem>>, %arg6: memref<576x64xbf16, #tpu.memory_space<vmem>>, %arg7: memref<1x64xf32, #tpu.memory_space<vmem>>, %arg8: memref<64x256xbf16, #tpu.memory_space<vmem>>, %arg9: memref<1x256xf32, #tpu.memory_space<vmem>>, %arg10: memref<256x64xbf16, #tpu.memory_space<vmem>>, %arg11: memref<1x64xf32, #tpu.memory_space<vmem>>, %arg12: memref<576x64xbf16, #tpu.memory_space<vmem>>, %arg13: memref<1x64xf32, #tpu.memory_space<vmem>>, %arg14: memref<64x256xbf16, #tpu.memory_space<vmem>>, %arg15: memref<1x256xf32, #tpu.memory_space<vmem>>, %arg16: memref<256x256xbf16, #tpu.memory_space<vmem>>, %arg17: memref<1x256xf32, #tpu.memory_space<vmem>>, %arg18: memref<32x256xf32, #tpu.memory_space<vmem>>, %arg19: memref<2x32xbf16, #tpu.memory_space<vmem>>, %arg20: memref<256x81xbf16, #tpu.memory_space<vmem>>, %arg21: memref<1x81xf32, #tpu.memory_space<vmem>>, %arg22: memref<64x1xbf16, #tpu.memory_space<vmem>>, %arg23: memref<1x1xf32, #tpu.memory_space<vmem>>, %arg24: memref<2x17xf32, #tpu.memory_space<vmem>>, %arg25: memref<2x1xf32, #tpu.memory_space<vmem>>) attributes {dimension_semantics = [], scalar_prefetch = 0 : i64, scratch_operands = 0 : i64, tpu.core_type = #tpu.core_type<tc>} {
    %c0 = arith.constant 0 : index
    %c0_0 = arith.constant 0 : index
    %0 = vector.load %arg0[%c0, %c0_0] : memref<32x32xbf16, #tpu.memory_space<vmem>>, vector<32x32xbf16>
    %c0_1 = arith.constant 0 : index
    %c0_2 = arith.constant 0 : index
    %1 = vector.load %arg1[%c0_1, %c0_2] : memref<32x256xbf16, #tpu.memory_space<vmem>>, vector<32x256xbf16>
    %cst = arith.constant dense<0.000000e+00> : vector<32x256xf32>
    %2 = tpu.matmul %0, %1, %cst {dimension_numbers = #tpu.dot_dimension_numbers<[1], [0], [0], [1], [0, 0, 1, 1], [], []>} : vector<32x32xbf16>, vector<32x256xbf16>, vector<32x256xf32> -> vector<32x256xf32>
    %c0_3 = arith.constant 0 : index
    %c0_4 = arith.constant 0 : index
    %3 = vector.load %arg2[%c0_3, %c0_4] : memref<1x256xf32, #tpu.memory_space<vmem>>, vector<1x256xf32>
    %4 = vector.broadcast %3 : vector<1x256xf32> to vector<32x256xf32>
    %5 = arith.addf %2, %4 : vector<32x256xf32>
    %6 = arith.truncf %5 : vector<32x256xf32> to vector<32x256xbf16>
    %c0_5 = arith.constant 0 : index
    %c0_6 = arith.constant 0 : index
    %7 = vector.load %arg4[%c0_5, %c0_6] : memref<256x64xbf16, #tpu.memory_space<vmem>>, vector<256x64xbf16>
    %cst_7 = arith.constant dense<0.000000e+00> : vector<32x64xf32>
    %8 = tpu.matmul %6, %7, %cst_7 {dimension_numbers = #tpu.dot_dimension_numbers<[1], [0], [0], [1], [0, 0, 1, 1], [], []>} : vector<32x256xbf16>, vector<256x64xbf16>, vector<32x64xf32> -> vector<32x64xf32>
    %c0_8 = arith.constant 0 : index
    %c0_9 = arith.constant 0 : index
    %9 = vector.load %arg5[%c0_8, %c0_9] : memref<1x64xf32, #tpu.memory_space<vmem>>, vector<1x64xf32>
    %10 = vector.broadcast %9 : vector<1x64xf32> to vector<32x64xf32>
    %11 = arith.addf %8, %10 : vector<32x64xf32>
    %cst_10 = arith.constant 0.000000e+00 : f32
    %12 = vector.broadcast %cst_10 : f32 to vector<32x64xf32>
    %13 = arith.maximumf %11, %12 : vector<32x64xf32>
    %c5_i32 = arith.constant 5 : i32
    %14 = tpu.dynamic_rotate %13 by %c5_i32 dim 0 : vector<32x64xf32>, i32 -> vector<32x64xf32>
    %c0_11 = arith.constant 0 : index
    %c0_12 = arith.constant 0 : index
    %c0_13 = arith.constant 0 : index
    %15 = vector.load %arg3[%c0_11, %c0_12, %c0_13] : memref<9x32x1xf32, #tpu.memory_space<vmem>>, vector<1x32x1xf32>
    %16 = vector.shape_cast %15 : vector<1x32x1xf32> to vector<32x1xf32>
    %17 = vector.broadcast %16 : vector<32x1xf32> to vector<32x64xf32>
    %18 = arith.mulf %14, %17 : vector<32x64xf32>
    %c4_i32 = arith.constant 4 : i32
    %19 = tpu.dynamic_rotate %13 by %c4_i32 dim 0 : vector<32x64xf32>, i32 -> vector<32x64xf32>
    %c1 = arith.constant 1 : index
    %c0_14 = arith.constant 0 : index
    %c0_15 = arith.constant 0 : index
    %20 = vector.load %arg3[%c1, %c0_14, %c0_15] : memref<9x32x1xf32, #tpu.memory_space<vmem>>, vector<1x32x1xf32>
    %21 = vector.shape_cast %20 : vector<1x32x1xf32> to vector<32x1xf32>
    %22 = vector.broadcast %21 : vector<32x1xf32> to vector<32x64xf32>
    %23 = arith.mulf %19, %22 : vector<32x64xf32>
    %c3_i32 = arith.constant 3 : i32
    %24 = tpu.dynamic_rotate %13 by %c3_i32 dim 0 : vector<32x64xf32>, i32 -> vector<32x64xf32>
    %c2 = arith.constant 2 : index
    %c0_16 = arith.constant 0 : index
    %c0_17 = arith.constant 0 : index
    %25 = vector.load %arg3[%c2, %c0_16, %c0_17] : memref<9x32x1xf32, #tpu.memory_space<vmem>>, vector<1x32x1xf32>
    %26 = vector.shape_cast %25 : vector<1x32x1xf32> to vector<32x1xf32>
    %27 = vector.broadcast %26 : vector<32x1xf32> to vector<32x64xf32>
    %28 = arith.mulf %24, %27 : vector<32x64xf32>
    %c1_i32 = arith.constant 1 : i32
    %29 = tpu.dynamic_rotate %13 by %c1_i32 dim 0 : vector<32x64xf32>, i32 -> vector<32x64xf32>
    %c3 = arith.constant 3 : index
    %c0_18 = arith.constant 0 : index
    %c0_19 = arith.constant 0 : index
    %30 = vector.load %arg3[%c3, %c0_18, %c0_19] : memref<9x32x1xf32, #tpu.memory_space<vmem>>, vector<1x32x1xf32>
    %31 = vector.shape_cast %30 : vector<1x32x1xf32> to vector<32x1xf32>
    %32 = vector.broadcast %31 : vector<32x1xf32> to vector<32x64xf32>
    %33 = arith.mulf %29, %32 : vector<32x64xf32>
    %c31_i32 = arith.constant 31 : i32
    %34 = tpu.dynamic_rotate %13 by %c31_i32 dim 0 : vector<32x64xf32>, i32 -> vector<32x64xf32>
    %c5 = arith.constant 5 : index
    %c0_20 = arith.constant 0 : index
    %c0_21 = arith.constant 0 : index
    %35 = vector.load %arg3[%c5, %c0_20, %c0_21] : memref<9x32x1xf32, #tpu.memory_space<vmem>>, vector<1x32x1xf32>
    %36 = vector.shape_cast %35 : vector<1x32x1xf32> to vector<32x1xf32>
    %37 = vector.broadcast %36 : vector<32x1xf32> to vector<32x64xf32>
    %38 = arith.mulf %34, %37 : vector<32x64xf32>
    %c29_i32 = arith.constant 29 : i32
    %39 = tpu.dynamic_rotate %13 by %c29_i32 dim 0 : vector<32x64xf32>, i32 -> vector<32x64xf32>
    %c6 = arith.constant 6 : index
    %c0_22 = arith.constant 0 : index
    %c0_23 = arith.constant 0 : index
    %40 = vector.load %arg3[%c6, %c0_22, %c0_23] : memref<9x32x1xf32, #tpu.memory_space<vmem>>, vector<1x32x1xf32>
    %41 = vector.shape_cast %40 : vector<1x32x1xf32> to vector<32x1xf32>
    %42 = vector.broadcast %41 : vector<32x1xf32> to vector<32x64xf32>
    %43 = arith.mulf %39, %42 : vector<32x64xf32>
    %c28_i32 = arith.constant 28 : i32
    %44 = tpu.dynamic_rotate %13 by %c28_i32 dim 0 : vector<32x64xf32>, i32 -> vector<32x64xf32>
    %c7 = arith.constant 7 : index
    %c0_24 = arith.constant 0 : index
    %c0_25 = arith.constant 0 : index
    %45 = vector.load %arg3[%c7, %c0_24, %c0_25] : memref<9x32x1xf32, #tpu.memory_space<vmem>>, vector<1x32x1xf32>
    %46 = vector.shape_cast %45 : vector<1x32x1xf32> to vector<32x1xf32>
    %47 = vector.broadcast %46 : vector<32x1xf32> to vector<32x64xf32>
    %48 = arith.mulf %44, %47 : vector<32x64xf32>
    %c27_i32 = arith.constant 27 : i32
    %49 = tpu.dynamic_rotate %13 by %c27_i32 dim 0 : vector<32x64xf32>, i32 -> vector<32x64xf32>
    %c8 = arith.constant 8 : index
    %c0_26 = arith.constant 0 : index
    %c0_27 = arith.constant 0 : index
    %50 = vector.load %arg3[%c8, %c0_26, %c0_27] : memref<9x32x1xf32, #tpu.memory_space<vmem>>, vector<1x32x1xf32>
    %51 = vector.shape_cast %50 : vector<1x32x1xf32> to vector<32x1xf32>
    %52 = vector.broadcast %51 : vector<32x1xf32> to vector<32x64xf32>
    %53 = arith.mulf %49, %52 : vector<32x64xf32>
    %54 = tpu.concatenate %18, %23, %28, %33, %13, %38, %43, %48, %53 in 1 : vector<32x64xf32>, vector<32x64xf32>, vector<32x64xf32>, vector<32x64xf32>, vector<32x64xf32>, vector<32x64xf32>, vector<32x64xf32>, vector<32x64xf32>, vector<32x64xf32> -> vector<32x576xf32>
    %55 = arith.truncf %54 : vector<32x576xf32> to vector<32x576xbf16>
    %c0_28 = arith.constant 0 : index
    %c0_29 = arith.constant 0 : index
    %56 = vector.load %arg6[%c0_28, %c0_29] : memref<576x64xbf16, #tpu.memory_space<vmem>>, vector<576x64xbf16>
    %cst_30 = arith.constant dense<0.000000e+00> : vector<32x64xf32>
    %57 = tpu.matmul %55, %56, %cst_30 {dimension_numbers = #tpu.dot_dimension_numbers<[1], [0], [0], [1], [0, 0, 1, 1], [], []>} : vector<32x576xbf16>, vector<576x64xbf16>, vector<32x64xf32> -> vector<32x64xf32>
    %c0_31 = arith.constant 0 : index
    %c0_32 = arith.constant 0 : index
    %58 = vector.load %arg7[%c0_31, %c0_32] : memref<1x64xf32, #tpu.memory_space<vmem>>, vector<1x64xf32>
    %59 = vector.broadcast %58 : vector<1x64xf32> to vector<32x64xf32>
    %60 = arith.addf %57, %59 : vector<32x64xf32>
    %cst_33 = arith.constant 0.000000e+00 : f32
    %61 = vector.broadcast %cst_33 : f32 to vector<32x64xf32>
    %62 = arith.maximumf %60, %61 : vector<32x64xf32>
    %63 = arith.truncf %62 : vector<32x64xf32> to vector<32x64xbf16>
    %c0_34 = arith.constant 0 : index
    %c0_35 = arith.constant 0 : index
    %64 = vector.load %arg8[%c0_34, %c0_35] : memref<64x256xbf16, #tpu.memory_space<vmem>>, vector<64x256xbf16>
    %cst_36 = arith.constant dense<0.000000e+00> : vector<32x256xf32>
    %65 = tpu.matmul %63, %64, %cst_36 {dimension_numbers = #tpu.dot_dimension_numbers<[1], [0], [0], [1], [0, 0, 1, 1], [], []>} : vector<32x64xbf16>, vector<64x256xbf16>, vector<32x256xf32> -> vector<32x256xf32>
    %c0_37 = arith.constant 0 : index
    %c0_38 = arith.constant 0 : index
    %66 = vector.load %arg9[%c0_37, %c0_38] : memref<1x256xf32, #tpu.memory_space<vmem>>, vector<1x256xf32>
    %67 = vector.broadcast %66 : vector<1x256xf32> to vector<32x256xf32>
    %68 = arith.addf %65, %67 : vector<32x256xf32>
    %69 = arith.addf %68, %5 : vector<32x256xf32>
    %cst_39 = arith.constant 0.000000e+00 : f32
    %70 = vector.broadcast %cst_39 : f32 to vector<32x256xf32>
    %71 = arith.maximumf %69, %70 : vector<32x256xf32>
    %72 = arith.truncf %71 : vector<32x256xf32> to vector<32x256xbf16>
    %c0_40 = arith.constant 0 : index
    %c0_41 = arith.constant 0 : index
    %73 = vector.load %arg10[%c0_40, %c0_41] : memref<256x64xbf16, #tpu.memory_space<vmem>>, vector<256x64xbf16>
    %cst_42 = arith.constant dense<0.000000e+00> : vector<32x64xf32>
    %74 = tpu.matmul %72, %73, %cst_42 {dimension_numbers = #tpu.dot_dimension_numbers<[1], [0], [0], [1], [0, 0, 1, 1], [], []>} : vector<32x256xbf16>, vector<256x64xbf16>, vector<32x64xf32> -> vector<32x64xf32>
    %c0_43 = arith.constant 0 : index
    %c0_44 = arith.constant 0 : index
    %75 = vector.load %arg11[%c0_43, %c0_44] : memref<1x64xf32, #tpu.memory_space<vmem>>, vector<1x64xf32>
    %76 = vector.broadcast %75 : vector<1x64xf32> to vector<32x64xf32>
    %77 = arith.addf %74, %76 : vector<32x64xf32>
    %cst_45 = arith.constant 0.000000e+00 : f32
    %78 = vector.broadcast %cst_45 : f32 to vector<32x64xf32>
    %79 = arith.maximumf %77, %78 : vector<32x64xf32>
    %c5_i32_46 = arith.constant 5 : i32
    %80 = tpu.dynamic_rotate %79 by %c5_i32_46 dim 0 : vector<32x64xf32>, i32 -> vector<32x64xf32>
    %c0_47 = arith.constant 0 : index
    %c0_48 = arith.constant 0 : index
    %c0_49 = arith.constant 0 : index
    %81 = vector.load %arg3[%c0_47, %c0_48, %c0_49] : memref<9x32x1xf32, #tpu.memory_space<vmem>>, vector<1x32x1xf32>
    %82 = vector.shape_cast %81 : vector<1x32x1xf32> to vector<32x1xf32>
    %83 = vector.broadcast %82 : vector<32x1xf32> to vector<32x64xf32>
    %84 = arith.mulf %80, %83 : vector<32x64xf32>
    %c4_i32_50 = arith.constant 4 : i32
    %85 = tpu.dynamic_rotate %79 by %c4_i32_50 dim 0 : vector<32x64xf32>, i32 -> vector<32x64xf32>
    %c1_51 = arith.constant 1 : index
    %c0_52 = arith.constant 0 : index
    %c0_53 = arith.constant 0 : index
    %86 = vector.load %arg3[%c1_51, %c0_52, %c0_53] : memref<9x32x1xf32, #tpu.memory_space<vmem>>, vector<1x32x1xf32>
    %87 = vector.shape_cast %86 : vector<1x32x1xf32> to vector<32x1xf32>
    %88 = vector.broadcast %87 : vector<32x1xf32> to vector<32x64xf32>
    %89 = arith.mulf %85, %88 : vector<32x64xf32>
    %c3_i32_54 = arith.constant 3 : i32
    %90 = tpu.dynamic_rotate %79 by %c3_i32_54 dim 0 : vector<32x64xf32>, i32 -> vector<32x64xf32>
    %c2_55 = arith.constant 2 : index
    %c0_56 = arith.constant 0 : index
    %c0_57 = arith.constant 0 : index
    %91 = vector.load %arg3[%c2_55, %c0_56, %c0_57] : memref<9x32x1xf32, #tpu.memory_space<vmem>>, vector<1x32x1xf32>
    %92 = vector.shape_cast %91 : vector<1x32x1xf32> to vector<32x1xf32>
    %93 = vector.broadcast %92 : vector<32x1xf32> to vector<32x64xf32>
    %94 = arith.mulf %90, %93 : vector<32x64xf32>
    %c1_i32_58 = arith.constant 1 : i32
    %95 = tpu.dynamic_rotate %79 by %c1_i32_58 dim 0 : vector<32x64xf32>, i32 -> vector<32x64xf32>
    %c3_59 = arith.constant 3 : index
    %c0_60 = arith.constant 0 : index
    %c0_61 = arith.constant 0 : index
    %96 = vector.load %arg3[%c3_59, %c0_60, %c0_61] : memref<9x32x1xf32, #tpu.memory_space<vmem>>, vector<1x32x1xf32>
    %97 = vector.shape_cast %96 : vector<1x32x1xf32> to vector<32x1xf32>
    %98 = vector.broadcast %97 : vector<32x1xf32> to vector<32x64xf32>
    %99 = arith.mulf %95, %98 : vector<32x64xf32>
    %c31_i32_62 = arith.constant 31 : i32
    %100 = tpu.dynamic_rotate %79 by %c31_i32_62 dim 0 : vector<32x64xf32>, i32 -> vector<32x64xf32>
    %c5_63 = arith.constant 5 : index
    %c0_64 = arith.constant 0 : index
    %c0_65 = arith.constant 0 : index
    %101 = vector.load %arg3[%c5_63, %c0_64, %c0_65] : memref<9x32x1xf32, #tpu.memory_space<vmem>>, vector<1x32x1xf32>
    %102 = vector.shape_cast %101 : vector<1x32x1xf32> to vector<32x1xf32>
    %103 = vector.broadcast %102 : vector<32x1xf32> to vector<32x64xf32>
    %104 = arith.mulf %100, %103 : vector<32x64xf32>
    %c29_i32_66 = arith.constant 29 : i32
    %105 = tpu.dynamic_rotate %79 by %c29_i32_66 dim 0 : vector<32x64xf32>, i32 -> vector<32x64xf32>
    %c6_67 = arith.constant 6 : index
    %c0_68 = arith.constant 0 : index
    %c0_69 = arith.constant 0 : index
    %106 = vector.load %arg3[%c6_67, %c0_68, %c0_69] : memref<9x32x1xf32, #tpu.memory_space<vmem>>, vector<1x32x1xf32>
    %107 = vector.shape_cast %106 : vector<1x32x1xf32> to vector<32x1xf32>
    %108 = vector.broadcast %107 : vector<32x1xf32> to vector<32x64xf32>
    %109 = arith.mulf %105, %108 : vector<32x64xf32>
    %c28_i32_70 = arith.constant 28 : i32
    %110 = tpu.dynamic_rotate %79 by %c28_i32_70 dim 0 : vector<32x64xf32>, i32 -> vector<32x64xf32>
    %c7_71 = arith.constant 7 : index
    %c0_72 = arith.constant 0 : index
    %c0_73 = arith.constant 0 : index
    %111 = vector.load %arg3[%c7_71, %c0_72, %c0_73] : memref<9x32x1xf32, #tpu.memory_space<vmem>>, vector<1x32x1xf32>
    %112 = vector.shape_cast %111 : vector<1x32x1xf32> to vector<32x1xf32>
    %113 = vector.broadcast %112 : vector<32x1xf32> to vector<32x64xf32>
    %114 = arith.mulf %110, %113 : vector<32x64xf32>
    %c27_i32_74 = arith.constant 27 : i32
    %115 = tpu.dynamic_rotate %79 by %c27_i32_74 dim 0 : vector<32x64xf32>, i32 -> vector<32x64xf32>
    %c8_75 = arith.constant 8 : index
    %c0_76 = arith.constant 0 : index
    %c0_77 = arith.constant 0 : index
    %116 = vector.load %arg3[%c8_75, %c0_76, %c0_77] : memref<9x32x1xf32, #tpu.memory_space<vmem>>, vector<1x32x1xf32>
    %117 = vector.shape_cast %116 : vector<1x32x1xf32> to vector<32x1xf32>
    %118 = vector.broadcast %117 : vector<32x1xf32> to vector<32x64xf32>
    %119 = arith.mulf %115, %118 : vector<32x64xf32>
    %120 = tpu.concatenate %84, %89, %94, %99, %79, %104, %109, %114, %119 in 1 : vector<32x64xf32>, vector<32x64xf32>, vector<32x64xf32>, vector<32x64xf32>, vector<32x64xf32>, vector<32x64xf32>, vector<32x64xf32>, vector<32x64xf32>, vector<32x64xf32> -> vector<32x576xf32>
    %121 = arith.truncf %120 : vector<32x576xf32> to vector<32x576xbf16>
    %c0_78 = arith.constant 0 : index
    %c0_79 = arith.constant 0 : index
    %122 = vector.load %arg12[%c0_78, %c0_79] : memref<576x64xbf16, #tpu.memory_space<vmem>>, vector<576x64xbf16>
    %cst_80 = arith.constant dense<0.000000e+00> : vector<32x64xf32>
    %123 = tpu.matmul %121, %122, %cst_80 {dimension_numbers = #tpu.dot_dimension_numbers<[1], [0], [0], [1], [0, 0, 1, 1], [], []>} : vector<32x576xbf16>, vector<576x64xbf16>, vector<32x64xf32> -> vector<32x64xf32>
    %c0_81 = arith.constant 0 : index
    %c0_82 = arith.constant 0 : index
    %124 = vector.load %arg13[%c0_81, %c0_82] : memref<1x64xf32, #tpu.memory_space<vmem>>, vector<1x64xf32>
    %125 = vector.broadcast %124 : vector<1x64xf32> to vector<32x64xf32>
    %126 = arith.addf %123, %125 : vector<32x64xf32>
    %cst_83 = arith.constant 0.000000e+00 : f32
    %127 = vector.broadcast %cst_83 : f32 to vector<32x64xf32>
    %128 = arith.maximumf %126, %127 : vector<32x64xf32>
    %129 = arith.truncf %128 : vector<32x64xf32> to vector<32x64xbf16>
    %c0_84 = arith.constant 0 : index
    %c0_85 = arith.constant 0 : index
    %130 = vector.load %arg14[%c0_84, %c0_85] : memref<64x256xbf16, #tpu.memory_space<vmem>>, vector<64x256xbf16>
    %cst_86 = arith.constant dense<0.000000e+00> : vector<32x256xf32>
    %131 = tpu.matmul %129, %130, %cst_86 {dimension_numbers = #tpu.dot_dimension_numbers<[1], [0], [0], [1], [0, 0, 1, 1], [], []>} : vector<32x64xbf16>, vector<64x256xbf16>, vector<32x256xf32> -> vector<32x256xf32>
    %c0_87 = arith.constant 0 : index
    %c0_88 = arith.constant 0 : index
    %132 = vector.load %arg15[%c0_87, %c0_88] : memref<1x256xf32, #tpu.memory_space<vmem>>, vector<1x256xf32>
    %133 = vector.broadcast %132 : vector<1x256xf32> to vector<32x256xf32>
    %134 = arith.addf %131, %133 : vector<32x256xf32>
    %135 = arith.addf %134, %71 : vector<32x256xf32>
    %cst_89 = arith.constant 0.000000e+00 : f32
    %136 = vector.broadcast %cst_89 : f32 to vector<32x256xf32>
    %137 = arith.maximumf %135, %136 : vector<32x256xf32>
    %138 = arith.truncf %137 : vector<32x256xf32> to vector<32x256xbf16>
    %c0_90 = arith.constant 0 : index
    %c0_91 = arith.constant 0 : index
    %139 = vector.load %arg16[%c0_90, %c0_91] : memref<256x256xbf16, #tpu.memory_space<vmem>>, vector<256x256xbf16>
    %cst_92 = arith.constant dense<0.000000e+00> : vector<32x256xf32>
    %140 = tpu.matmul %138, %139, %cst_92 {dimension_numbers = #tpu.dot_dimension_numbers<[1], [0], [0], [1], [0, 0, 1, 1], [], []>} : vector<32x256xbf16>, vector<256x256xbf16>, vector<32x256xf32> -> vector<32x256xf32>
    %c0_93 = arith.constant 0 : index
    %c0_94 = arith.constant 0 : index
    %141 = vector.load %arg17[%c0_93, %c0_94] : memref<1x256xf32, #tpu.memory_space<vmem>>, vector<1x256xf32>
    %142 = vector.broadcast %141 : vector<1x256xf32> to vector<32x256xf32>
    %143 = arith.addf %140, %142 : vector<32x256xf32>
    %cst_95 = arith.constant 0.000000e+00 : f32
    %144 = vector.broadcast %cst_95 : f32 to vector<32x256xf32>
    %145 = arith.maximumf %143, %144 : vector<32x256xf32>
    %c0_96 = arith.constant 0 : index
    %c0_97 = arith.constant 0 : index
    %146 = vector.load %arg18[%c0_96, %c0_97] : memref<32x256xf32, #tpu.memory_space<vmem>>, vector<32x256xf32>
    %147 = arith.mulf %145, %146 : vector<32x256xf32>
    %148 = arith.truncf %147 : vector<32x256xf32> to vector<32x256xbf16>
    %c0_98 = arith.constant 0 : index
    %c0_99 = arith.constant 0 : index
    %149 = vector.load %arg19[%c0_98, %c0_99] : memref<2x32xbf16, #tpu.memory_space<vmem>>, vector<2x32xbf16>
    %cst_100 = arith.constant dense<0.000000e+00> : vector<2x256xf32>
    %150 = tpu.matmul %149, %148, %cst_100 {dimension_numbers = #tpu.dot_dimension_numbers<[1], [0], [0], [1], [0, 0, 1, 1], [], []>} : vector<2x32xbf16>, vector<32x256xbf16>, vector<2x256xf32> -> vector<2x256xf32>
    %151 = arith.truncf %150 : vector<2x256xf32> to vector<2x256xbf16>
    %c0_101 = arith.constant 0 : index
    %c0_102 = arith.constant 0 : index
    %152 = vector.load %arg20[%c0_101, %c0_102] : memref<256x81xbf16, #tpu.memory_space<vmem>>, vector<256x81xbf16>
    %cst_103 = arith.constant dense<0.000000e+00> : vector<2x81xf32>
    %153 = tpu.matmul %151, %152, %cst_103 {dimension_numbers = #tpu.dot_dimension_numbers<[1], [0], [0], [1], [0, 0, 1, 1], [], []>} : vector<2x256xbf16>, vector<256x81xbf16>, vector<2x81xf32> -> vector<2x81xf32>
    %c0_104 = arith.constant 0 : index
    %c0_105 = arith.constant 0 : index
    %154 = vector.load %arg21[%c0_104, %c0_105] : memref<1x81xf32, #tpu.memory_space<vmem>>, vector<1x81xf32>
    %155 = vector.broadcast %154 : vector<1x81xf32> to vector<2x81xf32>
    %156 = arith.addf %153, %155 : vector<2x81xf32>
    %157 = vector.extract_strided_slice %156 {offsets = [0, 0], sizes = [2, 64], strides = [1, 1]} : vector<2x81xf32> to vector<2x64xf32>
    %158 = vector.extract_strided_slice %156 {offsets = [0, 64], sizes = [2, 17], strides = [1, 1]} : vector<2x81xf32> to vector<2x17xf32>
    %159 = arith.truncf %157 : vector<2x64xf32> to vector<2x64xbf16>
    %c0_106 = arith.constant 0 : index
    %c0_107 = arith.constant 0 : index
    %160 = vector.load %arg22[%c0_106, %c0_107] : memref<64x1xbf16, #tpu.memory_space<vmem>>, vector<64x1xbf16>
    %cst_108 = arith.constant dense<0.000000e+00> : vector<2x1xf32>
    %161 = tpu.matmul %159, %160, %cst_108 {dimension_numbers = #tpu.dot_dimension_numbers<[1], [0], [0], [1], [0, 0, 1, 1], [], []>} : vector<2x64xbf16>, vector<64x1xbf16>, vector<2x1xf32> -> vector<2x1xf32>
    %c0_109 = arith.constant 0 : index
    %c0_110 = arith.constant 0 : index
    %162 = vector.load %arg23[%c0_109, %c0_110] : memref<1x1xf32, #tpu.memory_space<vmem>>, vector<1x1xf32>
    %163 = vector.broadcast %162 : vector<1x1xf32> to vector<2x1xf32>
    %164 = arith.addf %161, %163 : vector<2x1xf32>
    %165 = math.tanh %164 : vector<2x1xf32>
    %c0_111 = arith.constant 0 : index
    %c0_112 = arith.constant 0 : index
    %166 = vector.load %arg25[%c0_111, %c0_112] : memref<2x1xf32, #tpu.memory_space<vmem>>, vector<2x1xf32>
    tpu.vector_store %arg25[%c0_111, %c0_112], %165 {strides = array<i32>} : memref<2x1xf32, #tpu.memory_space<vmem>>, vector<2x1xf32>,
    %cst_113 = arith.constant dense<0xFF800000> : vector<2xf32>
    %167 = vector.multi_reduction <maximumf>, %158, %cst_113 [1] : vector<2x17xf32> to vector<2xf32>
    %168 = vector.shape_cast %167 : vector<2xf32> to vector<2x1xf32>
    %169 = vector.broadcast %168 : vector<2x1xf32> to vector<2x17xf32>
    %170 = arith.subf %158, %169 : vector<2x17xf32>
    %171 = math.exp %170 : vector<2x17xf32>
    %cst_114 = arith.constant dense<0.000000e+00> : vector<2xf32>
    %172 = vector.multi_reduction <add>, %171, %cst_114 [1] : vector<2x17xf32> to vector<2xf32>
    %173 = vector.shape_cast %172 : vector<2xf32> to vector<2x1xf32>
    %174 = vector.broadcast %173 : vector<2x1xf32> to vector<2x17xf32>
    %175 = arith.divf %171, %174 : vector<2x17xf32>
    %c0_115 = arith.constant 0 : index
    %c0_116 = arith.constant 0 : index
    %176 = vector.load %arg24[%c0_115, %c0_116] : memref<2x17xf32, #tpu.memory_space<vmem>>, vector<2x17xf32>
    tpu.vector_store %arg24[%c0_115, %c0_116], %175 {strides = array<i32>} : memref<2x17xf32, #tpu.memory_space<vmem>>, vector<2x17xf32>,
    return
  }
}

</mosaic_0001>

<bundles_post_ra>
// kernel: tile.18
= control target key start
LH: loop header
LB: loop body
LE: loop exit
PB: predicated region body
PF: predicated region fallthrough
CT: control target
= control target key end

     0   :  { %s28_s0 = inlined_call_operand.vmem [shape: f32[16], index: 0, kind: input, shape index: {}]   ;;  %s29_s1 = inlined_call_operand.vmem [shape: f32[16,16], index: 1, kind: output, shape index: {}]  }
   0x1   :  { %v4_v0 = vld [vmem:[%s28_s0] ss:$0 sm:$0xff] }
   0x2   :  { %5 = vst [vmem:[%s29_s1] sm:$0xff] %v4_v0  ;;  %8 = vst [vmem:[%s29_s1 + $0x8] sm:$0xff] %v4_v0 }

// kernel: tile.19
= control target key start
LH: loop header
LB: loop body
LE: loop exit
PB: predicated region body
PF: predicated region fallthrough
CT: control target
= control target key end

     0   :  { %s7_s6 = smov 3  ;;  %s21_s9 = smov 3  ;;  %vm4_vm0 = vcmask 130048   ;;  %vm11_vm1 = vcmask 1048448   ;;  %vm18_vm2 = vcmask 917248   ;;  %vm25_vm3 = vcmask 786048   ;;  %s128_s0 = inlined_call_operand.vmem [shape: f32[16,16], index: 0, kind: input, shape index: {}]   ;;  %s129_s1 = inlined_call_operand.vmem [shape: f32[1,256], index: 1, kind: output, shape index: {}]  }
   0x1   :  { %v66_v0 = vld [vmem:[%s128_s0 + $0x7] ss:$8 sm:%s7_s6]   ;;  %s81_s10 = smov 112   ;;  %v68_v1 = vld [vmem:[%s128_s0 + $0x5] ss:$8 sm:%s21_s9]   ;;  %s14_s13 = smov 3 }
   0x2   :  { %9 = vrot.lane.b32.xlu0 %v66_v0, %s81_s10  ;;  %s82_s14 = smov 80   ;;  %v67_v2 = vld [vmem:[%s128_s0 + $0x6] ss:$8 sm:%s14_s13]   ;;  %s28_s17 = smov 3  ;;  %vm32_vm4 = vcmask 654848   ;;  %vm39_vm5 = vcmask 523648  }
   0x3   :  { %23 = vrot.lane.b32.xlu1 %v68_v1, %s82_s14  ;;  %v69_v3 = vld [vmem:[%s128_s0 + $0x4] ss:$8 sm:%s28_s17]   ;;  %s35_s20 = smov 3  ;;  %s42_s21 = smov 3  ;;  %vm46_vm6 = vcmask 392448   ;;  %vm53_vm7 = vcmask 261248  }
   0x4   :  { %s83_s22 = smov 96   ;;  %s84_s23 = smov 64   ;;  %v70_v4 = vld [vmem:[%s128_s0 + $0x3] ss:$8 sm:%s35_s20]   ;;  %v71_v5 = vld [vmem:[%s128_s0 + $0x2] ss:$8 sm:%s42_s21]  }
   0x5   :  { %s2_s26 = smov 3  ;;  %s49_s29 = smov 3 }
   0x6   :  { %16 = vrot.lane.b32.xlu0 %v67_v2, %s83_s22  ;;  %v3_v6 = vld [vmem:[%s128_s0] ss:$8 sm:%s2_s26]   ;;  %s85_s3 = smov 48   ;;  %s86_s4 = smov 32  }
   0x7   :  { %30 = vrot.lane.b32.xlu1 %v69_v3, %s84_s23  ;;  %5 = vst.msk [vmem:[#allocation0] ss:$8 sm:$0x3] %vm4_vm0, %v3_v6   ;;  %v72_v7 = vld [vmem:[%s128_s0 + $0x1] ss:$8 sm:%s49_s29]   ;;  %s87_s0 = smov 16  }
   0xa   :  { %37 = vrot.lane.b32.xlu0 %v70_v4, %s85_s3 }
   0xb   :  { %44 = vrot.lane.b32.xlu1 %v71_v5, %s86_s4 }
   0xe   :  { %51 = vrot.lane.b32.xlu0 %v72_v7, %s87_s0 }
  0x74   :  { %v10_v8 = vpop.permute.xlu0 %9  }
  0x75   :  { %12 = vst.msk [vmem:[#allocation0] ss:$8 sm:$0x3] %vm11_vm1, %v10_v8   ;;  %v24_v9 = vpop.permute.xlu1 %23  }
  0x78   :  { %v17_v10 = vpop.permute.xlu0 %16  }
  0x79   :  { %19 = vst.msk [vmem:[#allocation0] ss:$8 sm:$0x3] %vm18_vm2, %v17_v10   ;;  %v31_v11 = vpop.permute.xlu1 %30  }
  0x7a   :  { %26 = vst.msk [vmem:[#allocation0] ss:$8 sm:$0x3] %vm25_vm3, %v24_v9  }
  0x7b   :  { %33 = vst.msk [vmem:[#allocation0] ss:$8 sm:$0x3] %vm32_vm4, %v31_v11  }
  0x7c   :  { %v38_v12 = vpop.permute.xlu0 %37  }
  0x7d   :  { %40 = vst.msk [vmem:[#allocation0] ss:$8 sm:$0x3] %vm39_vm5, %v38_v12   ;;  %v45_v13 = vpop.permute.xlu1 %44  }
  0x7e   :  { %47 = vst.msk [vmem:[#allocation0] ss:$8 sm:$0x3] %vm46_vm6, %v45_v13  }
  0x80   :  { %v52_v14 = vpop.permute.xlu0 %51  }
  0x81   :  { %54 = vst.msk [vmem:[#allocation0] ss:$8 sm:$0x3] %vm53_vm7, %v52_v14  }
  0x88   :  { %v58_v15 = vld [vmem:[#allocation0] sm:$0x1]  ;;  %v62_v16 = vld [vmem:[#allocation0 + $0x8] sm:$0x1] }
  0x89   :  { %60 = vst [vmem:[%s129_s1] sm:$0x1] %v58_v15  ;;  %73 = vst [vmem:[%s129_s1 + $0x1] sm:$0x1] %v62_v16 }

// kernel: resnet_forward.1
= control target key start
LH: loop header
LB: loop body
LE: loop exit
PB: predicated region body
PF: predicated region fallthrough
CT: control target
= control target key end

     0   :  { %s5036_s0 = inlined_call_operand.vmem [shape: bf16[32,32], index: 0, kind: input, shape index: {}]   ;;  %s5037_s1 = inlined_call_operand.vmem [shape: bf16[32,256], index: 1, kind: input, shape index: {}]   ;;  %s5038_s2 = inlined_call_operand.vmem [shape: f32[1,256], index: 2, kind: input, shape index: {}]   ;;  %s5039_s3 = inlined_call_operand.vmem [shape: f32[9,32,1], index: 3, kind: input, shape index: {}]   ;;  %s5040_s4 = inlined_call_operand.vmem [shape: bf16[256,64], index: 4, kind: input, shape index: {}]   ;;  %s5041_s5 = inlined_call_operand.vmem [shape: f32[1,64], index: 5, kind: input, shape index: {}]   ;;  %s5042_s6 = inlined_call_operand.vmem [shape: bf16[576,64], index: 6, kind: input, shape index: {}]   ;;  %s5043_s7 = inlined_call_operand.vmem [shape: f32[1,64], index: 7, kind: input, shape index: {}]   ;;  %s5044_s8 = inlined_call_operand.vmem [shape: bf16[64,256], index: 8, kind: input, shape index: {}]   ;;  %s5045_s9 = inlined_call_operand.vmem [shape: f32[1,256], index: 9, kind: input, shape index: {}]   ;;  %s5046_s10 = inlined_call_operand.vmem [shape: bf16[256,64], index: 10, kind: input, shape index: {}]   ;;  %s5047_s11 = inlined_call_operand.vmem [shape: f32[1,64], index: 11, kind: input, shape index: {}]   ;;  %s5048_s12 = inlined_call_operand.vmem [shape: bf16[576,64], index: 12, kind: input, shape index: {}]   ;;  %s5049_s13 = inlined_call_operand.vmem [shape: f32[1,64], index: 13, kind: input, shape index: {}]   ;;  %s5050_s14 = inlined_call_operand.vmem [shape: bf16[64,256], index: 14, kind: input, shape index: {}]   ;;  %s5051_s15 = inlined_call_operand.vmem [shape: f32[1,256], index: 15, kind: input, shape index: {}]   ;;  %s5052_s16 = inlined_call_operand.vmem [shape: bf16[256,256], index: 16, kind: input, shape index: {}]   ;;  %s5053_s17 = inlined_call_operand.vmem [shape: f32[1,256], index: 17, kind: input, shape index: {}]   ;;  %s5054_s18 = inlined_call_operand.vmem [shape: f32[32,256], index: 18, kind: input, shape index: {}]   ;;  %s5055_s19 = inlined_call_operand.vmem [shape: bf16[2,32], index: 19, kind: input, shape index: {}]   ;;  %s5056_s20 = inlined_call_operand.vmem [shape: bf16[256,81], index: 20, kind: input, shape index: {}]   ;;  %s5057_s21 = inlined_call_operand.vmem [shape: f32[1,81], index: 21, kind: input, shape index: {}]   ;;  %s5058_s22 = inlined_call_operand.vmem [shape: bf16[64,1], index: 22, kind: input, shape index: {}]   ;;  %s5059_s23 = inlined_call_operand.<no memory space> [shape: f32[1,1], index: 23, kind: input, shape index: {}]   ;;  %s5060_s24 = inlined_call_operand.hbm [shape: f32[2,17], index: 24, kind: output, shape index: {0}]   ;;  %s5061_s25 = inlined_call_operand.vmem [shape: f32[2,1], index: 25, kind: output, shape index: {1}]  }
   0x1   :  { %5084 = sst [smem:[#allocation20_spill]] %s5036_s0  ;;  %v31_v0 = vstv %s5059_s23 }
   0x2   :  { %5085 = sst [smem:[#allocation21_spill]] %s5037_s1  ;;  %32 = vst [vmem:[#allocation2] sm:$0x1] %v31_v0 }
   0x3   :  { %5086 = sst [smem:[#allocation22_spill]] %s5038_s2 }
   0x4   :  { %5087 = sst [smem:[#allocation23_spill]] %s5039_s3 }
   0x5   :  { %5088 = sst [smem:[#allocation24_spill]] %s5040_s4 }
   0x6   :  { %5089 = sst [smem:[#allocation25_spill]] %s5041_s5 }
   0x7   :  { %5090 = sst [smem:[#allocation26_spill]] %s5042_s6 }
   0x8   :  { %5091 = sst [smem:[#allocation27_spill]] %s5043_s7 }
   0x9   :  { %5092 = sst [smem:[#allocation28_spill]] %s5044_s8 }
   0xa   :  { %5093 = sst [smem:[#allocation29_spill]] %s5045_s9 }
   0xb   :  { %s5094_s7 = sld [smem:[#allocation21_spill]]  ;;  %v5068_v3 = vmov 0   ;;  %s5095_s9 = sld [smem:[#allocation20_spill]]  ;;  %vm133_vm0 = vcmask 261120  }
   0xc   :  { %172 = vmatprep.mubr.bf16.mxu0 %v5068_v3  ;;  %3395 = vset.pattern.permute.xlu0 %v5068_v3  ;;  %s5096_s29 = sld [smem:[#allocation24_spill]] }
   0xd   :  { %3396 = vset.pattern.permute.xlu1 %v5068_v3 }
  0x11   :  { %v3477_v1 = vld [vmem:[%s5094_s7 + $0x4] ss:$8 sps:$4 sm:$0xff]   ;;  %v3479_v2 = vld [vmem:[%s5094_s7] ss:$8 sps:$4 sm:$0xff]   ;;  %v3480_v4 = vld [vmem:[%s5094_s7 + $0x14] ss:$8 sps:$4 sm:$0xff]  }
  0x12   :  { %140 = vmatprep.subr.bf16.mxu0 %v3477_v1  ;;  %v3482_v5 = vld [vmem:[%s5094_s7 + $0x10] ss:$8 sps:$4 sm:$0xff]   ;;  %v3483_v6 = vld [vmem:[%s5095_s9] sm:$0xff]   ;;  %v3487_v9 = vld [vmem:[%s5096_s29 + $0x48] sm:$0xff]  }
  0x13   :  { %141 = vmatpush1.bf16.msra.mxu0 %v3479_v2  ;;  %v3485_v7 = vld [vmem:[%s5096_s29 + $0x40] sm:$0xff]   ;;  %v3488_v10 = vld [vmem:[%s5096_s29 + $0x8] sm:$0xff]   ;;  %v3489_v11 = vld [vmem:[%s5096_s29 + $0x50] sm:$0xff]  }
  0x14   :  { %142 = vmatprep.subr.bf16.mxu0 %v3480_v4  ;;  %v3486_v8 = vld [vmem:[%s5096_s29] sm:$0xff]   ;;  %3147 = vmatprep.subr.bf16.mxu1 %v3485_v7  ;;  %v3490_v12 = vld [vmem:[%s5096_s29 + $0x10] sm:$0xff]   ;;  %v3491_v13 = vld [vmem:[%s5096_s29 + $0x58] sm:$0xff]  }
  0x15   :  { %3148 = vmatpush3.bf16.msra.mxu1 %v3486_v8  ;;  %v3484_v14 = vld [vmem:[%s5095_s9 + $0x8] sm:$0xff]   ;;  %v3492_v15 = vld [vmem:[%s5096_s29 + $0x18] sm:$0xff]   ;;  %v3493_v16 = vld [vmem:[%s5096_s29 + $0x60] sm:$0xff]  }
  0x16   :  { %3149 = vmatprep.subr.bf16.mxu1 %v3487_v9  ;;  %v3494_v17 = vld [vmem:[%s5096_s29 + $0x20] sm:$0xff]   ;;  %v3495_v18 = vld [vmem:[%s5096_s29 + $0x68] sm:$0xff]   ;;  %v3497_v20 = vld [vmem:[%s5096_s29 + $0x70] sm:$0xff]  }
  0x17   :  { %143 = vmatpush1.bf16.msra.mxu0 %v3482_v5  ;;  %v3496_v19 = vld [vmem:[%s5096_s29 + $0x28] sm:$0xff]   ;;  %v3498_v21 = vld [vmem:[%s5096_s29 + $0x30] sm:$0xff]   ;;  %v3499_v22 = vld [vmem:[%s5096_s29 + $0x78] sm:$0xff]  }
  0x18   :  { %v3500_v23 = vld [vmem:[%s5096_s29 + $0x38] sm:$0xff]  }
  0x19   :  { %3150 = vmatpush3.bf16.msra.mxu1 %v3488_v10 }
  0x1a   :  { %2929 = vmatmul.mubr.msk.bf16.vlgmr.msra.gmra.mrb[0].mxu0 %vm133_vm0, %v3483_v6  ;;  %3151 = vmatprep.subr.bf16.mxu1 %v3489_v11 }
  0x1b   :  { %182 = vmatprep.mubr.bf16.mxu0 %v5068_v3 }
  0x1d   :  { %3152 = vmatpush3.bf16.msra.mxu1 %v3490_v12 }
  0x1e   :  { %3153 = vmatprep.subr.bf16.mxu1 %v3491_v13 }
  0x21   :  { %3154 = vmatpush3.bf16.msra.mxu1 %v3492_v15 }
  0x22   :  { %2930 = vmatmul.mubr.msk.bf16.gmra.mrb[4].mxu0 %vm133_vm0, %v3484_v14  ;;  %3155 = vmatprep.subr.bf16.mxu1 %v3493_v16 }
  0x25   :  { %3156 = vmatpush3.bf16.msra.mxu1 %v3494_v17 }
  0x26   :  { %3157 = vmatprep.subr.bf16.mxu1 %v3495_v18 }
  0x29   :  { %3158 = vmatpush3.bf16.msra.mxu1 %v3496_v19 }
  0x2a   :  { %3159 = vmatprep.subr.bf16.mxu1 %v3497_v20 }
  0x2d   :  { %3160 = vmatpush3.bf16.msra.mxu1 %v3498_v21 }
  0x2e   :  { %3161 = vmatprep.subr.bf16.mxu1 %v3499_v22 }
  0x31   :  { %3162 = vmatpush3.bf16.msra.mxu1 %v3500_v23 }
  0x32   :  { %33 = vsyncpa [#allocation4], 0  ;;  %s5097_s26 = sld [smem:[#allocation23_spill]]  ;;  %v93_v54 = vlaneseq  ;;  %s5098_s1 = sld [smem:[#allocation22_spill]]  ;;  %vm727_vm6 = vcmask 523264   ;;  %vm3714_vm7 = vmmov 0  }
  0x33   :  { %s5099_s23 = sld [smem:[#allocation26_spill]]  ;;  %s5100_s29 = sld [smem:[#allocation25_spill]]  ;;  %vm2883_vm8 = vcmask 656896   ;;  %vm2881_vm9 = vcmask 1024   ;;  %vm2894_vm10 = vcmask 132096  }
  0x34   :  { %v4011_v55 = vshrl.u32 %v93_v54, 7  ;;  %s3712_s0 = smov 64   ;;  %s5116_s3 = sld [smem:[#allocation28_spill]] }
  0x35   :  { %s3715_s2 = smov [#allocation3]  }
  0x36   :  { %v4014_v56 = vsub.s32 1, %v4011_v55  ;;  %v4020_v58 = vsub.s32 0, %v4011_v55  ;;  %vm504_vm1 = vcmp.lt.s32.totalorder %v4011_v55, 1  ;;  %vm428_vm2 = vcmp.lt.s32.totalorder %v4011_v55, 4  ;;  %s2911_s6 = sshll.u32 %s3715_s2, 4  ;;  %s2912_s6 = int_to_ptr.vmem [resolvable:$true] %s2911_s6 }
  0x37   :  { %vm542_vm3 = vcmp.lt.s32.totalorder %v4011_v55, 7  ;;  %vm391_vm4 = vcmp.lt.s32.totalorder %v4011_v55, 5  ;;  %vm466_vm5 = vcmp.lt.s32.totalorder %v4011_v55, 3  ;;  %p3692_p1 = scmp.lt.s32.totalorder %s2912_s6, %s2912_s6 }
  0x38   :  { %v2956_v24 = vld [vmem:[%s5097_s26 + $0x60] sm:$0xff]  ;;  %v2957_v26 = vld [vmem:[%s5097_s26 + $0x68] sm:$0xff]  ;;  %v2958_v28 = vld [vmem:[%s5097_s26 + $0x70] sm:$0xff] }
  0x39   :  { %v2948_v25 = vld [vmem:[%s5097_s26 + $0x20] sm:$0xff]  ;;  %516 = vperm.xlu0 %3395, %v2956_v24   ;;  %v2949_v27 = vld [vmem:[%s5097_s26 + $0x28] sm:$0xff]  ;;  %v2959_v29 = vld [vmem:[%s5097_s26 + $0x78] sm:$0xff] }
  0x3a   :  { %440 = vperm.xlu1 %3396, %v2948_v25   ;;  %v2950_v30 = vld [vmem:[%s5097_s26 + $0x30] sm:$0xff]  ;;  %v2951_v31 = vld [vmem:[%s5097_s26 + $0x38] sm:$0xff]  ;;  %v2968_v32 = vld [vmem:[%s5097_s26 + $0xe0] sm:$0xff] }
  0x3b   :  { %v2969_v33 = vld [vmem:[%s5097_s26 + $0xe8] sm:$0xff]  ;;  %v2960_v34 = vld [vmem:[%s5097_s26 + $0xa0] sm:$0xff]  ;;  %v2970_v36 = vld [vmem:[%s5097_s26 + $0xf0] sm:$0xff] }
  0x3c   :  { %v2961_v35 = vld [vmem:[%s5097_s26 + $0xa8] sm:$0xff]  ;;  %v2971_v37 = vld [vmem:[%s5097_s26 + $0xf8] sm:$0xff]  ;;  %v2962_v38 = vld [vmem:[%s5097_s26 + $0xb0] sm:$0xff] }
  0x3d   :  { %521 = vperm.xlu0 %3395, %v2957_v26   ;;  %v2963_v39 = vld [vmem:[%s5097_s26 + $0xb8] sm:$0xff]  ;;  %v2952_v40 = vld [vmem:[%s5097_s26 + $0x40] sm:$0xff]  ;;  %v2953_v41 = vld [vmem:[%s5097_s26 + $0x48] sm:$0xff] }
  0x3e   :  { %445 = vperm.xlu1 %3396, %v2949_v27   ;;  %v396_v42 = vld [vmem:[%s5097_s26] sm:$0xff]  ;;  %v397_v43 = vld [vmem:[%s5097_s26 + $0x8] sm:$0xff]  ;;  %v2954_v44 = vld [vmem:[%s5097_s26 + $0x50] sm:$0xff] }
  0x3f   :  { %v2955_v45 = vld [vmem:[%s5097_s26 + $0x58] sm:$0xff]  ;;  %v398_v46 = vld [vmem:[%s5097_s26 + $0x10] sm:$0xff]  ;;  %v2964_v48 = vld [vmem:[%s5097_s26 + $0xc0] sm:$0xff] }
  0x40   :  { %v399_v47 = vld [vmem:[%s5097_s26 + $0x18] sm:$0xff]  ;;  %v2965_v49 = vld [vmem:[%s5097_s26 + $0xc8] sm:$0xff]  ;;  %v2972_v50 = vld [vmem:[%s5097_s26 + $0x100] sm:$0xff] }
  0x41   :  { %526 = vperm.xlu0 %3395, %v2958_v28   ;;  %v2973_v51 = vld [vmem:[%s5097_s26 + $0x108] sm:$0xff]  ;;  %v2975_v52 = vld [vmem:[%s5097_s26 + $0x118] sm:$0xff]  ;;  %v2974_v53 = vld [vmem:[%s5097_s26 + $0x110] sm:$0xff] }
  0x42   :  { %531 = vperm.xlu1 %3396, %v2959_v29   ;;  %v91_v57 = vld [vmem:[%s5098_s1] sm:$0x3]  ;;  %v3503_v20 = vld [vmem:[%s5099_s23 + $0x48] sm:$0xff]   ;;  %v3505_v22 = vld [vmem:[%s5099_s23 + $0x50] sm:$0xff]  }
  0x43   :  { %v100_v60 = vrot.slane %v91_v57, %v4014_v56  ;;  %v96_v61 = vrot.slane %v91_v57, %v4020_v58  ;;  %v3501_v18 = vld [vmem:[%s5099_s23 + $0x40] sm:$0xff]   ;;  %v3504_v21 = vld [vmem:[%s5099_s23 + $0x8] sm:$0xff]   ;;  %v3506_v24 = vld [vmem:[%s5099_s23 + $0x10] sm:$0xff]  }
  0x44   :  { %v3502_v19 = vld [vmem:[%s5099_s23] sm:$0xff]   ;;  %3175 = vmatprep.subr.bf16.mxu0 %v3501_v18  ;;  %v3507_v25 = vld [vmem:[%s5099_s23 + $0x58] sm:$0xff]   ;;  %v3511_v29 = vld [vmem:[%s5099_s23 + $0x68] sm:$0xff]  }
  0x45   :  { %450 = vperm.xlu0 %3395, %v2950_v30   ;;  %3176 = vmatpush3.bf16.msra.mxu0 %v3502_v19  ;;  %v3515_v23 = vld [vmem:[%s5099_s23 + $0xc0] sm:$0xff]   ;;  %v3508_v26 = vld [vmem:[%s5099_s23 + $0x18] sm:$0xff]   ;;  %v3512_v30 = vld [vmem:[%s5099_s23 + $0x28] sm:$0xff]  }
  0x46   :  { %455 = vperm.xlu1 %3396, %v2951_v31   ;;  %3177 = vmatprep.subr.bf16.mxu0 %v3503_v20  ;;  %v3509_v27 = vld [vmem:[%s5099_s23 + $0x60] sm:$0xff]   ;;  %v3513_v31 = vld [vmem:[%s5099_s23 + $0x70] sm:$0xff]   ;;  %v3519_v18 = vld [vmem:[%s5099_s23 + $0xc8] sm:$0xff]  }
  0x47   :  { %3203 = vmatprep.subr.bf16.mxu1 %v3515_v23  ;;  %v3510_v28 = vld [vmem:[%s5099_s23 + $0x20] sm:$0xff]   ;;  %v3520_v23 = vld [vmem:[%s5099_s23 + $0x88] sm:$0xff]  }
  0x49   :  { %612 = vperm.xlu0 %3395, %v2968_v32   ;;  %3178 = vmatpush3.bf16.msra.mxu0 %v3504_v21  ;;  %v3514_v32 = vld [vmem:[%s5099_s23 + $0x30] sm:$0xff]  }
  0x4a   :  { %617 = vperm.xlu1 %3396, %v2969_v33   ;;  %3179 = vmatprep.subr.bf16.mxu0 %v3505_v22 }
  0x4d   :  { %554 = vperm.xlu0 %3395, %v2960_v34   ;;  %3180 = vmatpush3.bf16.msra.mxu0 %v3506_v24 }
  0x4e   :  { %559 = vperm.xlu1 %3396, %v2961_v35   ;;  %3181 = vmatprep.subr.bf16.mxu0 %v3507_v25  ;;  %v3521_v25 = vld [vmem:[%s5099_s23 + $0xd0] sm:$0xff]  }
  0x51   :  { %622 = vperm.xlu0 %3395, %v2970_v36   ;;  %3182 = vmatpush3.bf16.msra.mxu0 %v3508_v26 }
  0x52   :  { %627 = vperm.xlu1 %3396, %v2971_v37   ;;  %3183 = vmatprep.subr.bf16.mxu0 %v3509_v27 }
  0x55   :  { %564 = vperm.xlu0 %3395, %v2962_v38   ;;  %3184 = vmatpush3.bf16.msra.mxu0 %v3510_v28 }
  0x56   :  { %569 = vperm.xlu1 %3396, %v2963_v39   ;;  %3185 = vmatprep.subr.bf16.mxu0 %v3511_v29 }
  0x59   :  { %478 = vperm.xlu0 %3395, %v2952_v40   ;;  %3186 = vmatpush3.bf16.msra.mxu0 %v3512_v30 }
  0x5a   :  { %483 = vperm.xlu1 %3396, %v2953_v41   ;;  %3187 = vmatprep.subr.bf16.mxu0 %v3513_v31 }
  0x5d   :  { %402 = vperm.xlu0 %3395, %v396_v42   ;;  %3188 = vmatpush3.bf16.msra.mxu0 %v3514_v32 }
  0x5e   :  { %407 = vperm.xlu1 %3396, %v397_v43  }
  0x61   :  { %488 = vperm.xlu0 %3395, %v2954_v44  }
  0x62   :  { %493 = vperm.xlu1 %3396, %v2955_v45   ;;  %v2931_v45 = vld [vmem:[%s5100_s29] ss:$0 sm:$0xff]  ;;  %s5117_s29 = sld [smem:[#allocation27_spill]] }
  0x65   :  { %412 = vperm.xlu0 %3395, %v398_v46  }
  0x66   :  { %417 = vperm.xlu1 %3396, %v399_v47  }
  0x69   :  { %583 = vperm.xlu0 %3395, %v2964_v48  }
  0x6a   :  { %588 = vperm.xlu1 %3396, %v2965_v49  }
  0x6d   :  { %641 = vperm.xlu0 %3395, %v2972_v50  }
  0x6e   :  { %646 = vperm.xlu1 %3396, %v2973_v51  }
  0x71   :  { %656 = vperm.xlu0 %3395, %v2975_v52  }
  0x72   :  { %651 = vperm.xlu1 %3396, %v2974_v53  }
  0xb8   :  { %v4093_v33 = vpop.permute.xlu0 %516 }
  0xb9   :  { %v4095_v34 = vpop.permute.xlu1 %440 }
  0xbc   :  { %v4097_v35 = vpop.permute.xlu0 %521 }
  0xbd   :  { %v4099_v36 = vpop.permute.xlu1 %445 }
  0xc0   :  { %v4101_v42 = vpop.permute.xlu0 %526 }
  0xc1   :  { %v4103_v44 = vpop.permute.xlu1 %531 }
  0xc4   :  { %v4108_v50 = vpop.permute.xlu0 %450 }
  0xc5   :  { %v4112_v54 = vpop.permute.xlu1 %455 }
  0xed   :  { %v174_v59 = vpop.f32.mrb[0].mxu0 }
  0xee   :  { %v176_v62 = vpop.f32.mrb[1].mxu0  ;;  %v4030_v5 = vadd.f32 %v174_v59, %v96_v61 }
  0xef   :  { %v178_v63 = vpop.f32.mrb[2].mxu0  ;;  %v4026_v2 = vadd.f32 %v176_v62, %v100_v60 }
  0xf0   :  { %v4024_v0 = vadd.f32 %v178_v63, %v96_v61  ;;  %v180_v1 = vpop.f32.mrb[3].mxu0 }
  0xf1   :  { %v4028_v4 = vadd.f32 %v180_v1, %v100_v60 }
  0xf2   :  { %v193_v7 = vpack.c.bf16 %v4024_v0, %v4030_v5 }
  0xf3   :  { %v194_v6 = vpack.c.bf16 %v4028_v4, %v4026_v2 }
  0xf5   :  { %v184_v8 = vpop.f32.mrb[4].mxu0  ;;  %364 = vmatprep.mubr.bf16.mxu1 %v194_v6 }
  0xf6   :  { %v186_v9 = vpop.f32.mrb[5].mxu0  ;;  %365 = vmatmul.mubr.bf16.vlgmr.msra.gmra.mrb[0].mxu1 %v193_v7  ;;  %v4042_v15 = vadd.f32 %v184_v8, %v96_v61  ;;  %v3516_v8 = vld [vmem:[%s5099_s23 + $0x80] sm:$0xff]  }
  0xf7   :  { %v188_v10 = vpop.f32.mrb[6].mxu0  ;;  %v4038_v13 = vadd.f32 %v186_v9, %v100_v60  ;;  %v3517_v9 = vld [vmem:[%s5099_s23 + $0x78] sm:$0xff]   ;;  %3204 = vmatpush3.bf16.msra.mxu1 %v3516_v8 }
  0xf8   :  { %v4036_v11 = vadd.f32 %v188_v10, %v96_v61  ;;  %v190_v12 = vpop.f32.mrb[7].mxu0  ;;  %v4129_v10 = vpop.permute.xlu0 %612  ;;  %3189 = vmatprep.subr.bf16.mxu0 %v3517_v9  ;;  %3205 = vmatprep.subr.bf16.mxu1 %v3519_v18 }
  0xf9   :  { %v4040_v14 = vadd.f32 %v190_v12, %v100_v60  ;;  %v4131_v12 = vpop.permute.xlu1 %617 }
  0xfa   :  { %v195_v17 = vpack.c.bf16 %v4036_v11, %v4042_v15 }
  0xfb   :  { %v196_v16 = vpack.c.bf16 %v4040_v14, %v4038_v13  ;;  %3206 = vmatpush3.bf16.msra.mxu1 %v3520_v23 }
  0xfc   :  { %3207 = vmatprep.subr.bf16.mxu1 %v3521_v25  ;;  %v3526_v25 = vld [vmem:[%s5099_s23 + $0xa0] sm:$0xff]  }
  0xfd   :  { %372 = vmatprep.mubr.bf16.mxu1 %v196_v16 }
  0xfe   :  { %373 = vmatmul.mubr.bf16.gmra.mrb[4].mxu1 %v195_v17  ;;  %v3518_v17 = vld [vmem:[%s5099_s23 + $0x38] sm:$0xff]  }
  0xff   :  { %3190 = vmatpush3.bf16.msra.mxu0 %v3518_v17 }
 0x1c9   :  { %v3163_v37 = vpop.f32.mrb[0].mxu1 }
 0x1ca   :  { %v3164_v38 = vpop.f32.mrb[1].mxu1 }
 0x1cb   :  { %v3165_v39 = vadd.f32 %v3164_v38, %v3163_v37  ;;  %v3166_v40 = vpop.f32.mrb[2].mxu1  ;;  %v4166_v37 = vpop.permute.xlu0 %554 }
 0x1cc   :  { %v3167_v41 = vpop.f32.mrb[3].mxu1  ;;  %v4168_v38 = vpop.permute.xlu1 %559 }
 0x1cd   :  { %v3168_v43 = vadd.f32 %v3167_v41, %v3166_v40  ;;  %v367_v47 = vadd.f32 %v3165_v39, %v2931_v45  ;;  %v3522_v40 = vld [vmem:[%s5099_s23 + $0x90] sm:$0xff]  }
 0x1ce   :  { %3208 = vmatpush3.bf16.msra.mxu1 %v3522_v40 }
 0x1cf   :  { %v370_v46 = vadd.f32 %v3168_v43, %v2931_v45  ;;  %v4114_v59 = vmax.f32 %v367_v47, 0.0  ;;  %v4204_v8 = vpop.permute.xlu0 %622 }
 0x1d0   :  { %5101 = vst [vmem:[#allocation6_spill] sm:$0xff] %v4204_v8  ;;  %v4206_v9 = vpop.permute.xlu1 %627 }
 0x1d1   :  { %v3169_v48 = vpop.f32.mrb[4].mxu1  ;;  %v4110_v51 = vmax.f32 %v370_v46, 0.0  ;;  %v500_v7 = vrot.slane %v4114_v59, 7  ;;  %v424_v16 = vrot.slane %v4114_v59, 4  ;;  %v3523_v46 = vld [vmem:[%s5099_s23 + $0xd8] sm:$0xff]   ;;  %5102 = vst [vmem:[#allocation7_spill] sm:$0xff] %v4206_v9 }
 0x1d2   :  { %v3170_v49 = vpop.f32.mrb[5].mxu1  ;;  %3209 = vmatprep.subr.bf16.mxu1 %v3523_v46 }
 0x1d3   :  { %v3171_v52 = vadd.f32 %v3170_v49, %v3169_v48  ;;  %v3172_v53 = vpop.f32.mrb[6].mxu1  ;;  %v501_v63 = vrot.slane %v4110_v51, 7  ;;  %v425_v1 = vrot.slane %v4110_v51, 4 }
 0x1d4   :  { %v3173_v57 = vpop.f32.mrb[7].mxu1 }
 0x1d5   :  { %v3174_v60 = vadd.f32 %v3173_v57, %v3172_v53  ;;  %v375_v61 = vadd.f32 %v3171_v52, %v2931_v45  ;;  %v507_v21 = vsel %vm504_vm1, %v500_v7, %v501_v63  ;;  %v431_v24 = vsel %vm428_vm2, %v424_v16, %v425_v1  ;;  %v2966_v52 = vld [vmem:[%s5097_s26 + $0xd0] sm:$0xff]  ;;  %v2967_v53 = vld [vmem:[%s5097_s26 + $0xd8] sm:$0xff] }
 0x1d6   :  { %v535_v28 = vmul.f32 %v4097_v35, %v507_v21  ;;  %v459_v31 = vmul.f32 %v4099_v36, %v431_v24  ;;  %v4217_v21 = vld [vmem:[%s5099_s23 + $0x100] sm:$0xff]  }
 0x1d7   :  { %v378_v62 = vadd.f32 %v3174_v60, %v2931_v45  ;;  %v4140_v19 = vmax.f32 %v375_v61, 0.0  ;;  %v539_v61 = vrot.slane %v4110_v51, 1  ;;  %3354 = vmatprep.subr.bf16.mxu0 %v4217_v21 }
 0x1d9   :  { %v4119_v6 = vmax.f32 %v378_v62, 0.0  ;;  %v502_v32 = vrot.slane %v4140_v19, 7  ;;  %v426_v39 = vrot.slane %v4140_v19, 4  ;;  %v540_v48 = vrot.slane %v4140_v19, 1  ;;  %v3524_v62 = vld [vmem:[%s5099_s23 + $0x98] sm:$0xff]  }
 0x1da   :  { %3210 = vmatpush3.bf16.msra.mxu1 %v3524_v62  ;;  %v3535_v62 = vld [vmem:[%s5099_s23 + $0xb8] sm:$0xff]  }
 0x1db   :  { %v503_v20 = vrot.slane %v4119_v6, 7  ;;  %v427_v22 = vrot.slane %v4119_v6, 4  ;;  %v506_v49 = vsel %vm504_vm1, %v501_v63, %v502_v32  ;;  %v430_v60 = vsel %vm428_vm2, %v425_v1, %v426_v39 }
 0x1dc   :  { %v536_v1 = vmul.f32 %v4101_v42, %v506_v49  ;;  %v544_v17 = vsel %vm542_vm3, %v539_v61, %v540_v48  ;;  %v541_v18 = vrot.slane %v4119_v6, 1 }
 0x1dd   :  { %v508_v26 = vsel %vm504_vm1, %v503_v20, %v500_v7  ;;  %v4158_v27 = vsel %vm428_vm2, %v427_v22, %v424_v16  ;;  %v505_v45 = vsel %vm504_vm1, %v502_v32, %v503_v20  ;;  %v429_v47 = vsel %vm428_vm2, %v426_v39, %v427_v22  ;;  %v3525_v7 = vld [vmem:[%s5099_s23 + $0xe0] sm:$0xff]  }
 0x1de   :  { %v534_v29 = vmul.f32 %v4093_v33, %v508_v26  ;;  %v458_v30 = vmul.f32 %v4095_v34, %v4158_v27  ;;  %v537_v57 = vmul.f32 %v4103_v44, %v505_v45  ;;  %v461_v63 = vmul.f32 %v4112_v54, %v429_v47  ;;  %3211 = vmatprep.subr.bf16.mxu1 %v3525_v7 }
 0x1df   :  { %v538_v16 = vrot.slane %v4114_v59, 1  ;;  %v460_v20 = vmul.f32 %v4108_v50, %v430_v60  ;;  %v630_v39 = vmul.f32 %v4129_v10, %v431_v24  ;;  %v632_v45 = vmul.f32 %v4204_v8, %v429_v47  ;;  %3212 = vmatpush3.bf16.msra.mxu1 %v3526_v25  ;;  %v3531_v8 = vld [vmem:[%s5099_s23 + $0x108] sm:$0xff]  }
 0x1e0   :  { %v3397_v41 = vpack.i.bf16 %v535_v28, %v534_v29  ;;  %v3402_v43 = vpack.i.bf16 %v459_v31, %v458_v30  ;;  %v3407_v22 = vpack.i.bf16 %v537_v57, %v536_v1  ;;  %v631_v28 = vmul.f32 %v4131_v12, %v430_v60  ;;  %v3527_v30 = vld [vmem:[%s5099_s23 + $0xe8] sm:$0xff]   ;;  %v3530_v57 = vld [vmem:[%s5099_s23 + $0xf0] sm:$0xff]  }
 0x1e1   :  { %v545_v23 = vsel %vm542_vm3, %v538_v16, %v539_v61  ;;  %v3417_v26 = vpack.i.bf16 %v461_v63, %v460_v20  ;;  %v573_v29 = vmul.f32 %v4168_v38, %v544_v17  ;;  %v543_v31 = vsel %vm542_vm3, %v540_v48, %v541_v18  ;;  %v3529_v48 = vld [vmem:[%s5099_s23 + $0xa8] sm:$0xff]   ;;  %3213 = vmatprep.subr.bf16.mxu1 %v3527_v30  ;;  %v3533_v61 = vld [vmem:[%s5099_s23 + $0xf8] sm:$0xff]  }
 0x1e2   :  { %3398 = vrot.lane.b32.xlu0 %v3397_v41, %s3712_s0  ;;  %3403 = vrot.lane.b32.xlu1 %v3402_v43, %s3712_s0  ;;  %v546_v32 = vsel %vm542_vm3, %v541_v18, %v538_v16  ;;  %v572_v40 = vmul.f32 %v4166_v37, %v545_v23  ;;  %v4238_v41 = vpop.permute.xlu0 %564  ;;  %v4240_v43 = vpop.permute.xlu1 %569  ;;  %v633_v46 = vmul.f32 %v4206_v9, %v4158_v27  ;;  %v3532_v27 = vld [vmem:[%s5099_s23 + $0xb0] sm:$0xff]   ;;  %v463_v30 = vrot.slane %v4110_v51, 5 }
 0x1e3   :  { %5103 = vst [vmem:[#allocation8_spill] sm:$0xff] %v4238_v41  ;;  %5104 = vst [vmem:[#allocation9_spill] sm:$0xff] %v4240_v43  ;;  %v3412_v49 = vpack.i.bf16 %v631_v28, %v630_v39  ;;  %v574_v24 = vmul.f32 %v4238_v41, %v543_v31  ;;  %3214 = vmatpush3.bf16.msra.mxu1 %v3529_v48  ;;  %v465_v31 = vrot.slane %v4119_v6, 5  ;;  %v385_v39 = vrot.slane %v4114_v59, 3 }
 0x1e4   :  { %v3427_v47 = vpack.i.bf16 %v633_v46, %v632_v45  ;;  %3215 = vmatprep.subr.bf16.mxu1 %v3530_v57 }
 0x1e6   :  { %593 = vperm.xlu0 %3395, %v2966_v52   ;;  %598 = vperm.xlu1 %3396, %v2967_v53   ;;  %v3422_v52 = vpack.i.bf16 %v573_v29, %v572_v40  ;;  %v575_v53 = vmul.f32 %v4240_v43, %v546_v32  ;;  %v4266_v63 = vpop.permute.xlu0 %478  ;;  %v4268_v7 = vpop.permute.xlu1 %483  ;;  %v386_v29 = vrot.slane %v4110_v51, 3  ;;  %v388_v32 = vrot.slane %v4119_v6, 3 }
 0x1e7   :  { %3216 = vmatpush3.bf16.msra.mxu1 %v3532_v27  ;;  %5105 = vst [vmem:[#allocation10_spill] sm:$0xff] %v4266_v63  ;;  %5106 = vst [vmem:[#allocation11_spill] sm:$0xff] %v4268_v7  ;;  %v462_v40 = vrot.slane %v4114_v59, 5 }
 0x1e8   :  { %v3432_v60 = vpack.i.bf16 %v575_v53, %v574_v24  ;;  %3217 = vmatprep.subr.bf16.mxu1 %v3533_v61  ;;  %v394_v45 = vsel %vm391_vm4, %v385_v39, %v386_v29  ;;  %v4312_v24 = vsel %vm391_vm4, %v388_v32, %v385_v39 }
 0x1ea   :  { %3408 = vrot.lane.b32.xlu0 %v3407_v22, %s3712_s0  ;;  %3418 = vrot.lane.b32.xlu1 %v3417_v26, %s3712_s0  ;;  %v4270_v1 = vpop.permute.xlu0 %402  ;;  %v4272_v16 = vpop.permute.xlu1 %407 }
 0x1eb   :  { %3218 = vmatpush3.bf16.msra.mxu1 %v3535_v62  ;;  %5107 = vst [vmem:[#allocation12_spill] sm:$0xff] %v4270_v1  ;;  %5108 = vst [vmem:[#allocation13_spill] sm:$0xff] %v4272_v16  ;;  %v421_v53 = vmul.f32 %v4272_v16, %v394_v45  ;;  %v420_v61 = vmul.f32 %v4270_v1, %v4312_v24 }
 0x1ee   :  { %3413 = vrot.lane.b32.xlu0 %v3412_v49, %s3712_s0  ;;  %3423 = vrot.lane.b32.xlu1 %v3422_v52, %s3712_s0  ;;  %v4274_v17 = vpop.permute.xlu0 %488  ;;  %v4276_v18 = vpop.permute.xlu1 %493  ;;  %v469_v49 = vsel %vm466_vm5, %v462_v40, %v463_v30  ;;  %v4308_v52 = vsel %vm466_vm5, %v465_v31, %v462_v40 }
 0x1ef   :  { %5109 = vst [vmem:[#allocation14_spill] sm:$0xff] %v4274_v17  ;;  %5110 = vst [vmem:[#allocation15_spill] sm:$0xff] %v4276_v18  ;;  %v497_v57 = vmul.f32 %v4268_v7, %v469_v49  ;;  %v496_v27 = vmul.f32 %v4266_v63, %v4308_v52 }
 0x1f2   :  { %3428 = vrot.lane.b32.xlu0 %v3427_v47, %s3712_s0  ;;  %3433 = vrot.lane.b32.xlu1 %v3432_v60, %s3712_s0  ;;  %v4278_v20 = vpop.permute.xlu0 %412  ;;  %v4280_v22 = vpop.permute.xlu1 %417 }
 0x1f3   :  { %5111 = vst [vmem:[#allocation16_spill] sm:$0xff] %v4278_v20  ;;  %5112 = vst [vmem:[#allocation17_spill] sm:$0xff] %v4280_v22 }
 0x1f6   :  { %v4282_v23 = vpop.permute.xlu0 %583  ;;  %v4284_v25 = vpop.permute.xlu1 %588 }
 0x1f7   :  { %5113 = vst [vmem:[#allocation18_spill] sm:$0xff] %v4282_v23 }
 0x1fa   :  { %v4286_v26 = vpop.permute.xlu0 %641  ;;  %v4288_v28 = vpop.permute.xlu1 %646 }
 0x1fb   :  { %5114 = vst [vmem:[#allocation19_spill] sm:$0xff] %v4288_v28 }
 0x1fe   :  { %v4300_v46 = vpop.permute.xlu0 %656  ;;  %v4302_v48 = vpop.permute.xlu1 %651 }
 0x254   :  { %v3399_v47 = vpop.permute.xlu0 %3398  ;;  %v3404_v60 = vpop.permute.xlu1 %3403 }
 0x255   :  { %v3401_v62 = vunpack.i.h.bf16 %v3399_v47  ;;  %v3400_v40 = vunpack.i.l.bf16 %v3399_v47  ;;  %v3406_v3 = vunpack.i.h.bf16 %v3404_v60  ;;  %v3405_v43 = vunpack.i.l.bf16 %v3404_v60 }
 0x257   :  { %v728_v39 = vsel %vm727_vm6, %v420_v61, %v3405_v43  ;;  %v729_v41 = vsel %vm727_vm6, %v421_v53, %v3406_v3  ;;  %v732_v16 = vsel %vm727_vm6, %v496_v27, %v3400_v40  ;;  %v733_v7 = vsel %vm727_vm6, %v497_v57, %v3401_v62  ;;  %v3534_v43 = vld [vmem:[%s5099_s23 + $0x110] sm:$0xff]   ;;  %v3536_v3 = vld [vmem:[%s5099_s23 + $0x118] sm:$0xff]   ;;  %s3687_s23 = scalar_lea.vmem %s2912_s6, 32 }
 0x258   :  { %v744_v9 = vpack.c.bf16 %v729_v41, %v728_v39  ;;  %v745_v63 = vpack.c.bf16 %v733_v7, %v732_v16  ;;  %v464_v41 = vrot.slane %v4140_v19, 5  ;;  %v387_v7 = vrot.slane %v4140_v19, 3  ;;  %p3688_p0 = scmp.ne.s32.totalorder %s2912_s6, %s3687_s23  ;;  %p3693_p2 = scmp.lt.s32.totalorder %s3687_s23, %s3687_s23 }
 0x25a   :  { %1087 = vmatprep.mubr.bf16.mxu0 %v745_v63  ;;  %v392_v16 = vsel %vm391_vm4, %v387_v7, %v388_v32  ;;  %v393_v53 = vsel %vm391_vm4, %v386_v29, %v387_v7  ;;  %v601_v32 = vmul.f32 %v4282_v23, %v394_v45  ;;  %p3694_p3 = por %p3693_p2, %p3692_p1 }
 0x25b   :  { %1088 = vmatmul.mubr.bf16.vlgmr.msra.gmra.mrb[8].mxu0 %v744_v9  ;;  %v423_v47 = vmul.f32 %v4280_v22, %v392_v16  ;;  %v659_v22 = vmul.f32 %v4286_v26, %v469_v49 }
 0x25c   :  { %3355 = vmatpush3.bf16.msra.mxu0 %v4217_v21  ;;  %v468_v21 = vsel %vm466_vm5, %v463_v30, %v464_v41  ;;  %v422_v30 = vmul.f32 %v4278_v20, %v393_v53  ;;  %p3695_p4 = pnand %p3694_p3, %p3688_p0 }
 0x25d   :  { %3356 = vmatprep.subr.bf16.mxu0 %v3531_v8  ;;  %v498_v57 = vmul.f32 %v4274_v17, %v468_v21 }
 0x260   :  { %3357 = vmatpush3.bf16.msra.mxu0 %v3531_v8  ;;  %v467_v8 = vsel %vm466_vm5, %v464_v41, %v465_v31 }
 0x261   :  { %3358 = vmatprep.subr.bf16.mxu0 %v3534_v43  ;;  %v499_v27 = vmul.f32 %v4276_v18, %v467_v8 }
 0x264   :  { %3359 = vmatpush3.bf16.msra.mxu0 %v3534_v43  ;;  %v660_v43 = vmul.f32 %v4288_v28, %v468_v21 }
 0x265   :  { %v4336_v63 = vpop.permute.xlu0 %593  ;;  %v4338_v9 = vpop.permute.xlu1 %598  ;;  %3360 = vmatprep.subr.bf16.mxu0 %v3536_v3 }
 0x266   :  { %v748_v28 = vpack.c.bf16 %v660_v43, %v659_v22  ;;  %v3537_v43 = vld [vmem:[%s5116_s3] ss:$8 sps:$4 sm:$0xff]  }
 0x268   :  { %3361 = vmatpush3.bf16.msra.mxu0 %v3536_v3 }
 0x269   :  { %v3409_v60 = vpop.permute.xlu0 %3408  ;;  %v3419_v61 = vpop.permute.xlu1 %3418 }
 0x26a   :  { %v3411_v62 = vunpack.i.h.bf16 %v3409_v60  ;;  %v3410_v40 = vunpack.i.l.bf16 %v3409_v60  ;;  %v3421_v31 = vunpack.i.h.bf16 %v3419_v61  ;;  %v3420_v39 = vunpack.i.l.bf16 %v3419_v61 }
 0x26b   :  { %v602_v61 = vmul.f32 %v4284_v25, %v393_v53  ;;  %v662_v53 = vmul.f32 %v4300_v46, %v4308_v52 }
 0x26c   :  { %v734_v29 = vsel %vm727_vm6, %v498_v57, %v3410_v40  ;;  %v735_v3 = vsel %vm727_vm6, %v499_v27, %v3411_v62  ;;  %v730_v41 = vsel %vm727_vm6, %v422_v30, %v3420_v39  ;;  %v731_v7 = vsel %vm727_vm6, %v423_v47, %v3421_v31 }
 0x26d   :  { %v3414_v18 = vpop.permute.xlu0 %3413  ;;  %v3424_v20 = vpop.permute.xlu1 %3423  ;;  %v750_v17 = vpack.c.bf16 %v735_v3, %v734_v29  ;;  %v749_v60 = vpack.c.bf16 %v731_v7, %v730_v41  ;;  %v3539_v29 = vld [vmem:[%s5116_s3 + $0x4] ss:$8 sps:$4 sm:$0xff]   ;;  %v3543_v3 = vld [vmem:[%s5116_s3 + $0x20] ss:$8 sps:$4 sm:$0xff]   ;;  %v3546_v7 = vld [vmem:[%s5116_s3 + $0x30] ss:$8 sps:$4 sm:$0xff]  }
 0x26e   :  { %v3416_v1 = vunpack.i.h.bf16 %v3414_v18  ;;  %v3415_v45 = vunpack.i.l.bf16 %v3414_v18  ;;  %v3426_v23 = vunpack.i.h.bf16 %v3424_v20  ;;  %v3425_v21 = vunpack.i.l.bf16 %v3424_v20  ;;  %1274 = vmatprep.subr.bf16.mxu0 %v3539_v29  ;;  %v3545_v41 = vld [vmem:[%s5116_s3 + $0x24] ss:$8 sps:$4 sm:$0xff]  }
 0x26f   :  { %1095 = vmatprep.mubr.bf16.mxu0 %v750_v17  ;;  %v661_v18 = vmul.f32 %v4302_v48, %v467_v8 }
 0x270   :  { %v737_v57 = vsel %vm727_vm6, %v4110_v51, %v3426_v23  ;;  %v736_v27 = vsel %vm727_vm6, %v4114_v59, %v3425_v21  ;;  %1096 = vmatmul.mubr.bf16.gmra.mrb[12].mxu0 %v749_v60  ;;  %v740_v49 = vsel %vm727_vm6, %v601_v32, %v3415_v45  ;;  %v741_v47 = vsel %vm727_vm6, %v602_v61, %v3416_v1  ;;  %v3548_v60 = vld [vmem:[%s5116_s3 + $0x34] ss:$8 sps:$4 sm:$0xff]   ;;  %v3549_v61 = vld [vmem:[%s5046_s10 + $0x40] sm:$0xff]   ;;  %v3551_v21 = vld [vmem:[%s5046_s10 + $0x48] sm:$0xff]  }
 0x271   :  { %v746_v30 = vpack.c.bf16 %v737_v57, %v736_v27  ;;  %v3429_v20 = vpop.permute.xlu0 %3428  ;;  %v3434_v22 = vpop.permute.xlu1 %3433  ;;  %3362 = vmatprep.mubr.msk.bf16.mxu0 %vm727_vm6, %v748_v28  ;;  %v747_v17 = vpack.c.bf16 %v741_v47, %v740_v49  ;;  %v603_v51 = vmul.f32 %v4336_v63, %v392_v16  ;;  %v604_v59 = vmul.f32 %v4338_v9, %v4312_v24  ;;  %v3550_v45 = vld [vmem:[%s5046_s10] sm:$0xff]   ;;  %v3552_v57 = vld [vmem:[%s5046_s10 + $0x8] sm:$0xff]   ;;  %v3553_v27 = vld [vmem:[%s5046_s10 + $0x50] sm:$0xff]  }
 0x272   :  { %v3431_v23 = vunpack.i.h.bf16 %v3429_v20  ;;  %v3430_v62 = vunpack.i.l.bf16 %v3429_v20  ;;  %v3436_v40 = vunpack.i.h.bf16 %v3434_v22  ;;  %v3435_v1 = vunpack.i.l.bf16 %v3434_v22  ;;  %3237 = vmatprep.subr.bf16.mxu1 %v3549_v61  ;;  %v3554_v49 = vld [vmem:[%s5046_s10 + $0x10] sm:$0xff]   ;;  %v3555_v47 = vld [vmem:[%s5046_s10 + $0x58] sm:$0xff]  }
 0x273   :  { %1136 = vmatprep.mubr.bf16.mxu1 %v747_v17  ;;  %v753_v39 = vpack.c.bf16 %v662_v53, %v661_v18  ;;  %v5115_v24 = vmov 0   ;;  %v3556_v53 = vld [vmem:[%s5046_s10 + $0x18] sm:$0xff]   ;;  %v3557_v18 = vld [vmem:[%s5046_s10 + $0x60] sm:$0xff]  }
 0x274   :  { %1137 = vmatmul.mubr.bf16.vlgmr.msra.gmra.mrb[8].mxu1 %v746_v30  ;;  %v742_v52 = vsel %vm727_vm6, %v603_v51, %v3430_v62  ;;  %v743_v8 = vsel %vm727_vm6, %v604_v59, %v3431_v23  ;;  %v738_v28 = vsel %vm727_vm6, %v4140_v19, %v3435_v1  ;;  %v739_v16 = vsel %vm727_vm6, %v4119_v6, %v3436_v40  ;;  %v3542_v19 = vld [vmem:[%s5116_s3 + $0x14] ss:$8 sps:$4 sm:$0xff]   ;;  %v3540_v6 = vld [vmem:[%s5116_s3 + $0x10] ss:$8 sps:$4 sm:$0xff]   ;;  %v3558_v30 = vld [vmem:[%s5046_s10 + $0x20] sm:$0xff]  }
 0x275   :  { %v752_v31 = vpack.c.bf16 %v743_v8, %v742_v52  ;;  %v751_v32 = vpack.c.bf16 %v739_v16, %v738_v28  ;;  %3238 = vmatpush3.bf16.msra.mxu1 %v3550_v45  ;;  %v2976_v8 = vld [vmem:[%s5117_s29] ss:$0 sm:$0xff]  ;;  %s5118_s29 = sld [smem:[#allocation29_spill]] }
 0x276   :  { %3239 = vmatprep.subr.bf16.mxu1 %v3551_v21 }
 0x277   :  { %1144 = vmatprep.mubr.bf16.mxu1 %v752_v31 }
 0x278   :  { %3363 = vmatmul.mubr.msk.bf16.vlgmr.msra.gmra.mrb[16].mxu0 %vm727_vm6, %v753_v39 }
 0x279   :  { %1306 = vmatprep.mubr.bf16.mxu0 %v5115_v24  ;;  %1275 = vmatpush1.bf16.msra.mxu0 %v3537_v43 }
 0x27a   :  { %1276 = vmatprep.subr.bf16.mxu0 %v3542_v19  ;;  %3240 = vmatpush3.bf16.msra.mxu1 %v3552_v57 }
 0x27b   :  { %3241 = vmatprep.subr.bf16.mxu1 %v3553_v27 }
 0x27c   :  { %1145 = vmatmul.mubr.bf16.gmra.mrb[12].mxu1 %v751_v32 }
 0x27d   :  { %1277 = vmatpush1.bf16.msra.mxu0 %v3540_v6 }
 0x27e   :  { %1278 = vmatprep.subr.bf16.mxu0 %v3545_v41  ;;  %3242 = vmatpush3.bf16.msra.mxu1 %v3554_v49 }
 0x27f   :  { %3243 = vmatprep.subr.bf16.mxu1 %v3555_v47 }
 0x281   :  { %1279 = vmatpush1.bf16.msra.mxu0 %v3543_v3 }
 0x282   :  { %1280 = vmatprep.subr.bf16.mxu0 %v3548_v60  ;;  %3244 = vmatpush3.bf16.msra.mxu1 %v3556_v53 }
 0x283   :  { %3245 = vmatprep.subr.bf16.mxu1 %v3557_v18 }
 0x285   :  { %1281 = vmatpush1.bf16.msra.mxu0 %v3546_v7 }
 0x286   :  { %3246 = vmatpush3.bf16.msra.mxu1 %v3558_v30 }
 0x32e   :  { %v3191_v20 = vpop.f32.mrb[8].mxu0 }
 0x32f   :  { %v3192_v22 = vpop.f32.mrb[9].mxu0 }
 0x330   :  { %v3193_v17 = vadd.f32 %v3192_v22, %v3191_v20  ;;  %v3194_v51 = vpop.f32.mrb[10].mxu0 }
 0x331   :  { %v3195_v59 = vpop.f32.mrb[11].mxu0 }
 0x332   :  { %v3196_v23 = vadd.f32 %v3195_v59, %v3194_v51  ;;  %v1090_v32 = vadd.f32 %v3193_v17, %v2976_v8 }
 0x334   :  { %v1093_v6 = vadd.f32 %v3196_v23, %v2976_v8 }
 0x343   :  { %v3197_v62 = vpop.f32.mrb[12].mxu0 }
 0x344   :  { %v3198_v40 = vpop.f32.mrb[13].mxu0 }
 0x345   :  { %v3199_v1 = vadd.f32 %v3198_v40, %v3197_v62  ;;  %v3200_v52 = vpop.f32.mrb[14].mxu0 }
 0x346   :  { %v3201_v31 = vpop.f32.mrb[15].mxu0 }
 0x347   :  { %v3202_v39 = vadd.f32 %v3201_v31, %v3200_v52  ;;  %v3219_v28 = vpop.f32.mrb[8].mxu1  ;;  %v1098_v53 = vadd.f32 %v3199_v1, %v2976_v8  ;;  %v3559_v1 = vld [vmem:[%s5046_s10 + $0x68] sm:$0xff]  }
 0x348   :  { %v3220_v16 = vpop.f32.mrb[9].mxu1  ;;  %3247 = vmatprep.subr.bf16.mxu1 %v3559_v1 }
 0x349   :  { %v3221_v43 = vadd.f32 %v3220_v16, %v3219_v28  ;;  %v3222_v29 = vpop.f32.mrb[10].mxu1  ;;  %v1101_v51 = vadd.f32 %v3202_v39, %v2976_v8  ;;  %v3560_v8 = vld [vmem:[%s5046_s10 + $0x28] sm:$0xff]   ;;  %v3561_v39 = vld [vmem:[%s5046_s10 + $0x70] sm:$0xff]  }
 0x34a   :  { %v3223_v19 = vpop.f32.mrb[11].mxu1  ;;  %3248 = vmatpush3.bf16.msra.mxu1 %v3560_v8 }
 0x34b   :  { %v3224_v3 = vadd.f32 %v3223_v19, %v3222_v29  ;;  %v3364_v41 = vpop.f32.mrb[16].mxu0  ;;  %v1139_v7 = vadd.f32 %v3221_v43, %v1090_v32  ;;  %v3562_v43 = vld [vmem:[%s5046_s10 + $0x30] sm:$0xff]   ;;  %3249 = vmatprep.subr.bf16.mxu1 %v3561_v39  ;;  %v3563_v29 = vld [vmem:[%s5046_s10 + $0x78] sm:$0xff]  }
 0x34c   :  { %v1187_v60 = vpop.f32.mrb[17].mxu0  ;;  %v3564_v19 = vld [vmem:[%s5046_s10 + $0x38] sm:$0xff]  }
 0x34d   :  { %v1188_v61 = vadd.f32 %v1187_v60, %v1139_v7  ;;  %v3365_v45 = vpop.f32.mrb[18].mxu0  ;;  %v1142_v21 = vadd.f32 %v3224_v3, %v1093_v6  ;;  %v1216_v6 = vld [vmem:[%s5118_s29] sm:$0x3] }
 0x34e   :  { %v1190_v57 = vpop.f32.mrb[19].mxu0  ;;  %3250 = vmatpush3.bf16.msra.mxu1 %v3562_v43  ;;  %v1221_v3 = vrot.slane %v1216_v6, %v4020_v58 }
 0x34f   :  { %v1191_v27 = vadd.f32 %v1190_v57, %v1142_v21  ;;  %v3225_v49 = vpop.f32.mrb[12].mxu1  ;;  %v1202_v18 = vmax.f32 %v1188_v61, 0.0  ;;  %3251 = vmatprep.subr.bf16.mxu1 %v3563_v29  ;;  %v3566_v29 = vld [vmem:[%s5048_s12] sm:$0xff]  }
 0x350   :  { %v3226_v47 = vpop.f32.mrb[13].mxu1 }
 0x351   :  { %v1203_v30 = vmax.f32 %v1191_v27, 0.0  ;;  %v3227_v20 = vadd.f32 %v3226_v47, %v3225_v49  ;;  %v3228_v22 = vpop.f32.mrb[14].mxu1 }
 0x352   :  { %v3229_v17 = vpop.f32.mrb[15].mxu1  ;;  %3252 = vmatpush3.bf16.msra.mxu1 %v3564_v19  ;;  %v3567_v19 = vld [vmem:[%s5048_s12 + $0x48] sm:$0xff]  }
 0x353   :  { %v1206_v59 = vpack.c.bf16 %v1203_v30, %v1202_v18  ;;  %v1147_v23 = vadd.f32 %v3227_v20, %v1098_v53  ;;  %v3230_v62 = vadd.f32 %v3229_v17, %v3228_v22 }
 0x355   :  { %v1196_v40 = vadd.f32 %v3364_v41, %v1147_v23  ;;  %v1150_v52 = vadd.f32 %v3230_v62, %v1101_v51  ;;  %3023 = vmatmul.mubr.msk.bf16.vlgmr.msra.gmra.mrb[20].mxu0 %vm727_vm6, %v1206_v59  ;;  %v1225_v41 = vrot.slane %v1216_v6, %v4014_v56  ;;  %v3570_v6 = vld [vmem:[%s5048_s12 + $0xc0] sm:$0xff]  }
 0x356   :  { %1316 = vmatprep.mubr.bf16.mxu0 %v5115_v24  ;;  %3293 = vmatprep.subr.bf16.mxu1 %v3570_v6  ;;  %v3025_v6 = vld [vmem:[%s5047_s11] ss:$0 sm:$0xff] }
 0x357   :  { %v1199_v31 = vadd.f32 %v3365_v45, %v1150_v52  ;;  %v1204_v28 = vmax.f32 %v1196_v40, 0.0 }
 0x359   :  { %v1205_v16 = vmax.f32 %v1199_v31, 0.0 }
 0x35b   :  { %v1207_v32 = vpack.c.bf16 %v1205_v16, %v1204_v28 }
 0x35d   :  { %3024 = vmatmul.mubr.msk.bf16.gmra.mrb[24].mxu0 %vm727_vm6, %v1207_v32 }
 0x428   :  { %v1308_v7 = vpop.f32.mrb[20].mxu0 }
 0x429   :  { %v1309_v60 = vadd.f32 %v1308_v7, %v1221_v3  ;;  %v1310_v61 = vpop.f32.mrb[21].mxu0  ;;  %v3574_v7 = vld [vmem:[%s5048_s12 + $0xc8] sm:$0xff]  }
 0x42a   :  { %v1311_v45 = vadd.f32 %v1310_v61, %v1225_v41  ;;  %v1312_v21 = vpop.f32.mrb[22].mxu0  ;;  %v3576_v61 = vld [vmem:[%s5048_s12 + $0x88] sm:$0xff]  }
 0x42b   :  { %v1313_v57 = vadd.f32 %v1312_v21, %v1221_v3  ;;  %v1314_v27 = vpop.f32.mrb[23].mxu0  ;;  %v4468_v53 = vadd.f32 %v1309_v60, %v4030_v5  ;;  %v3569_v60 = vld [vmem:[%s5048_s12 + $0x50] sm:$0xff]  }
 0x42c   :  { %v4465_v49 = vadd.f32 %v1311_v45, %v4026_v2  ;;  %v1315_v47 = vadd.f32 %v1314_v27, %v1225_v41  ;;  %v3578_v45 = vld [vmem:[%s5048_s12 + $0xd0] sm:$0xff]  }
 0x42d   :  { %v4471_v18 = vadd.f32 %v1313_v57, %v4024_v0  ;;  %v1335_v2 = vmax.f32 %v4468_v53, 0.0  ;;  %v3571_v21 = vld [vmem:[%s5048_s12 + $0x10] sm:$0xff]   ;;  %v3573_v57 = vld [vmem:[%s5048_s12 + $0x58] sm:$0xff]  }
 0x42e   :  { %v4474_v30 = vadd.f32 %v1315_v47, %v4028_v4  ;;  %v1336_v22 = vmax.f32 %v4465_v49, 0.0  ;;  %v3580_v27 = vld [vmem:[%s5048_s12 + $0x90] sm:$0xff]   ;;  %v3582_v47 = vld [vmem:[%s5048_s12 + $0xd8] sm:$0xff]  }
 0x42f   :  { %v1337_v20 = vmax.f32 %v4471_v18, 0.0 }
 0x430   :  { %v1338_v17 = vmax.f32 %v4474_v30, 0.0  ;;  %v1318_v51 = vpop.f32.mrb[24].mxu0 }
 0x431   :  { %v1319_v59 = vadd.f32 %v1318_v51, %v1221_v3  ;;  %v1320_v23 = vpop.f32.mrb[25].mxu0  ;;  %v1343_v4 = vpack.c.bf16 %v1337_v20, %v1335_v2  ;;  %v3575_v51 = vld [vmem:[%s5048_s12 + $0x18] sm:$0xff]  }
 0x432   :  { %v1321_v62 = vadd.f32 %v1320_v23, %v1225_v41  ;;  %v1322_v5 = vpop.f32.mrb[26].mxu0  ;;  %v1344_v0 = vpack.c.bf16 %v1338_v17, %v1336_v22  ;;  %v3584_v23 = vld [vmem:[%s5048_s12 + $0x98] sm:$0xff]  }
 0x433   :  { %v1323_v40 = vadd.f32 %v1322_v5, %v1221_v3  ;;  %v1324_v52 = vpop.f32.mrb[27].mxu0  ;;  %v4492_v16 = vadd.f32 %v1319_v59, %v4042_v15  ;;  %v3572_v3 = vld [vmem:[%s5048_s12 + $0x80] sm:$0xff]  }
 0x434   :  { %v4489_v31 = vadd.f32 %v1321_v62, %v4038_v13  ;;  %v1325_v28 = vadd.f32 %v1324_v52, %v1225_v41  ;;  %1514 = vmatprep.mubr.bf16.mxu1 %v1344_v0  ;;  %v3568_v41 = vld [vmem:[%s5048_s12 + $0x8] sm:$0xff]   ;;  %v3577_v59 = vld [vmem:[%s5048_s12 + $0x60] sm:$0xff]   ;;  %v3585_v52 = vld [vmem:[%s5048_s12 + $0x70] sm:$0xff]  }
 0x435   :  { %v4495_v32 = vadd.f32 %v1323_v40, %v4036_v11  ;;  %1515 = vmatmul.mubr.bf16.vlgmr.msra.gmra.mrb[16].mxu1 %v1343_v4  ;;  %v1339_v13 = vmax.f32 %v4492_v16, 0.0  ;;  %v3586_v62 = vld [vmem:[%s5048_s12 + $0xe0] sm:$0xff]   ;;  %v3581_v0 = vld [vmem:[%s5048_s12 + $0x68] sm:$0xff]  }
 0x436   :  { %v4498_v1 = vadd.f32 %v1325_v28, %v4040_v14  ;;  %v1340_v39 = vmax.f32 %v4489_v31, 0.0  ;;  %v3565_v14 = vld [vmem:[%s5048_s12 + $0x40] sm:$0xff]   ;;  %3294 = vmatpush3.bf16.msra.mxu1 %v3572_v3  ;;  %v3583_v40 = vld [vmem:[%s5048_s12 + $0x28] sm:$0xff]   ;;  %v3587_v28 = vld [vmem:[%s5048_s12 + $0x30] sm:$0xff]  }
 0x437   :  { %v1341_v8 = vmax.f32 %v4495_v32, 0.0  ;;  %3265 = vmatprep.subr.bf16.mxu0 %v3565_v14  ;;  %3295 = vmatprep.subr.bf16.mxu1 %v3574_v7  ;;  %v3579_v5 = vld [vmem:[%s5048_s12 + $0x20] sm:$0xff]  }
 0x438   :  { %v1342_v43 = vmax.f32 %v4498_v1, 0.0  ;;  %3266 = vmatpush3.bf16.msra.mxu0 %v3566_v29  ;;  %v3588_v4 = vld [vmem:[%s5048_s12 + $0xa0] sm:$0xff]  }
 0x439   :  { %v1345_v11 = vpack.c.bf16 %v1341_v8, %v1339_v13  ;;  %3267 = vmatprep.subr.bf16.mxu0 %v3567_v19  ;;  %v2322_v31 = vld [vmem:[%s5053_s17] sm:$0x3] }
 0x43a   :  { %v1346_v15 = vpack.c.bf16 %v1342_v43, %v1340_v39  ;;  %3296 = vmatpush3.bf16.msra.mxu1 %v3576_v61  ;;  %v2331_v32 = vrot.slane %v2322_v31, %v4014_v56 }
 0x43b   :  { %3297 = vmatprep.subr.bf16.mxu1 %v3578_v45 }
 0x43c   :  { %1522 = vmatprep.mubr.bf16.mxu1 %v1346_v15  ;;  %3268 = vmatpush3.bf16.msra.mxu0 %v3568_v41 }
 0x43d   :  { %1523 = vmatmul.mubr.bf16.gmra.mrb[20].mxu1 %v1345_v11  ;;  %3269 = vmatprep.subr.bf16.mxu0 %v3569_v60 }
 0x43e   :  { %3298 = vmatpush3.bf16.msra.mxu1 %v3580_v27 }
 0x43f   :  { %3299 = vmatprep.subr.bf16.mxu1 %v3582_v47 }
 0x440   :  { %3270 = vmatpush3.bf16.msra.mxu0 %v3571_v21 }
 0x441   :  { %3271 = vmatprep.subr.bf16.mxu0 %v3573_v57 }
 0x442   :  { %3300 = vmatpush3.bf16.msra.mxu1 %v3584_v23 }
 0x443   :  { %3301 = vmatprep.subr.bf16.mxu1 %v3586_v62 }
 0x444   :  { %3272 = vmatpush3.bf16.msra.mxu0 %v3575_v51 }
 0x445   :  { %3273 = vmatprep.subr.bf16.mxu0 %v3577_v59 }
 0x446   :  { %3302 = vmatpush3.bf16.msra.mxu1 %v3588_v4 }
 0x448   :  { %3274 = vmatpush3.bf16.msra.mxu0 %v3579_v5 }
 0x449   :  { %3275 = vmatprep.subr.bf16.mxu0 %v3581_v0 }
 0x44c   :  { %3276 = vmatpush3.bf16.msra.mxu0 %v3583_v40  ;;  %v3589_v40 = vld [vmem:[%s5048_s12 + $0x78] sm:$0xff]  }
 0x44d   :  { %3277 = vmatprep.subr.bf16.mxu0 %v3585_v52  ;;  %v3590_v52 = vld [vmem:[%s5048_s12 + $0xe8] sm:$0xff]  }
 0x44e   :  { %3303 = vmatprep.subr.bf16.mxu1 %v3590_v52 }
 0x450   :  { %3278 = vmatpush3.bf16.msra.mxu0 %v3587_v28  ;;  %v3591_v28 = vld [vmem:[%s5048_s12 + $0x38] sm:$0xff]  }
 0x451   :  { %3279 = vmatprep.subr.bf16.mxu0 %v3589_v40 }
 0x454   :  { %3280 = vmatpush3.bf16.msra.mxu0 %v3591_v28 }
 0x508   :  { %v3253_v15 = vpop.f32.mrb[16].mxu1 }
 0x509   :  { %v3254_v11 = vpop.f32.mrb[17].mxu1 }
 0x50a   :  { %v3255_v14 = vadd.f32 %v3254_v11, %v3253_v15  ;;  %v3256_v29 = vpop.f32.mrb[18].mxu1 }
 0x50b   :  { %v3257_v19 = vpop.f32.mrb[19].mxu1 }
 0x50c   :  { %v3258_v3 = vadd.f32 %v3257_v19, %v3256_v29  ;;  %v1517_v7 = vadd.f32 %v3255_v14, %v3025_v6  ;;  %v3592_v14 = vld [vmem:[%s5048_s12 + $0xa8] sm:$0xff]  }
 0x50d   :  { %3304 = vmatpush3.bf16.msra.mxu1 %v3592_v14 }
 0x50e   :  { %v1520_v41 = vadd.f32 %v3258_v3, %v3025_v6  ;;  %v4589_v27 = vmax.f32 %v1517_v7, 0.0 }
 0x510   :  { %v3259_v60 = vpop.f32.mrb[20].mxu1  ;;  %v4587_v61 = vmax.f32 %v1520_v41, 0.0  ;;  %v1571_v4 = vrot.slane %v4589_v27, 7  ;;  %v1547_v11 = vrot.slane %v4589_v27, 4 }
 0x511   :  { %v3260_v45 = vpop.f32.mrb[21].mxu1 }
 0x512   :  { %v3261_v21 = vadd.f32 %v3260_v45, %v3259_v60  ;;  %v3262_v57 = vpop.f32.mrb[22].mxu1  ;;  %v1572_v23 = vrot.slane %v4587_v61, 7  ;;  %v1548_v0 = vrot.slane %v4587_v61, 4  ;;  %v3593_v60 = vld [vmem:[%s5048_s12 + $0xf0] sm:$0xff]   ;;  %v4625_v45 = vld [vmem:[%s5048_s12 + $0x100] sm:$0xff]  }
 0x513   :  { %v3263_v47 = vpop.f32.mrb[23].mxu1  ;;  %3305 = vmatprep.subr.bf16.mxu1 %v3593_v60  ;;  %3366 = vmatprep.subr.bf16.mxu0 %v4625_v45 }
 0x514   :  { %v1525_v51 = vadd.f32 %v3261_v21, %v3025_v6  ;;  %v3264_v59 = vadd.f32 %v3263_v47, %v3262_v57  ;;  %v1577_v29 = vsel %vm504_vm1, %v1571_v4, %v1572_v23  ;;  %v1553_v41 = vsel %vm428_vm2, %v1547_v11, %v1548_v0  ;;  %v3595_v21 = vld [vmem:[%s5048_s12 + $0xb0] sm:$0xff]  }
 0x515   :  { %v1580_v52 = vmul.f32 %v1577_v29, %v4097_v35  ;;  %v1556_v14 = vmul.f32 %v1553_v41, %v4099_v36  ;;  %3306 = vmatpush3.bf16.msra.mxu1 %v3595_v21  ;;  %v3598_v36 = vld [vmem:[%s5048_s12 + $0xb8] sm:$0xff]  }
 0x516   :  { %v4592_v62 = vmax.f32 %v1525_v51, 0.0  ;;  %v1528_v5 = vadd.f32 %v3264_v59, %v3025_v6 }
 0x518   :  { %v4605_v15 = vmax.f32 %v1528_v5, 0.0  ;;  %v1573_v19 = vrot.slane %v4592_v62, 7  ;;  %v1549_v7 = vrot.slane %v4592_v62, 4  ;;  %v1585_v57 = vrot.slane %v4592_v62, 1 }
 0x51a   :  { %v1574_v6 = vrot.slane %v4605_v15, 7  ;;  %v1550_v3 = vrot.slane %v4605_v15, 4  ;;  %v1586_v29 = vrot.slane %v4605_v15, 1 }
 0x51c   :  { %v1578_v47 = vsel %vm504_vm1, %v1574_v6, %v1571_v4  ;;  %v1554_v51 = vsel %vm428_vm2, %v1550_v3, %v1547_v11  ;;  %v1575_v59 = vsel %vm504_vm1, %v1573_v19, %v1574_v6  ;;  %v1551_v5 = vsel %vm428_vm2, %v1549_v7, %v1550_v3 }
 0x51d   :  { %v1579_v40 = vmul.f32 %v1578_v47, %v4093_v33  ;;  %v1555_v28 = vmul.f32 %v1554_v51, %v4095_v34  ;;  %v1576_v4 = vsel %vm504_vm1, %v1572_v23, %v1573_v19  ;;  %v1552_v11 = vsel %vm428_vm2, %v1548_v0, %v1549_v7  ;;  %v3596_v34 = vld [vmem:[%s5048_s12 + $0xf8] sm:$0xff]  }
 0x51e   :  { %v1584_v6 = vrot.slane %v4587_v61, 1  ;;  %v1582_v33 = vmul.f32 %v1575_v59, %v4103_v44  ;;  %v1558_v35 = vmul.f32 %v1551_v5, %v4112_v54  ;;  %v1583_v23 = vrot.slane %v4589_v27, 1  ;;  %3307 = vmatprep.subr.bf16.mxu1 %v3596_v34 }
 0x51f   :  { %v3437_v3 = vpack.i.bf16 %v1580_v52, %v1579_v40  ;;  %v3442_v60 = vpack.i.bf16 %v1556_v14, %v1555_v28  ;;  %v1581_v44 = vmul.f32 %v1576_v4, %v4101_v42  ;;  %v1557_v54 = vmul.f32 %v1552_v11, %v4108_v50  ;;  %3308 = vmatpush3.bf16.msra.mxu1 %v3598_v36  ;;  %v5119_v28 = vld [vmem:[#allocation6_spill] sm:$0xff] }
 0x520   :  { %v1588_v0 = vsel %vm542_vm3, %v1584_v6, %v1585_v57  ;;  %v1600_v19 = vmul.f32 %v1552_v11, %v4131_v12  ;;  %v1589_v7 = vsel %vm542_vm3, %v1583_v23, %v1584_v6  ;;  %v1599_v40 = vmul.f32 %v1553_v41, %v4129_v10  ;;  %v5121_v6 = vld [vmem:[#allocation8_spill] sm:$0xff]  ;;  %v5122_v41 = vld [vmem:[#allocation9_spill] sm:$0xff] }
 0x521   :  { %3438 = vrot.lane.b32.xlu0 %v3437_v3, %s3712_s0  ;;  %3443 = vrot.lane.b32.xlu1 %v3442_v60, %s3712_s0  ;;  %v3447_v21 = vpack.i.bf16 %v1582_v33, %v1581_v44  ;;  %v3457_v47 = vpack.i.bf16 %v1558_v35, %v1557_v54  ;;  %v1592_v59 = vmul.f32 %v1588_v0, %v4168_v38  ;;  %v5120_v38 = vld [vmem:[#allocation7_spill] sm:$0xff]  ;;  %v1562_v33 = vrot.slane %v4605_v15, 5  ;;  %v5123_v54 = vld [vmem:[#allocation13_spill] sm:$0xff] }
 0x522   :  { %v1587_v52 = vsel %vm542_vm3, %v1585_v57, %v1586_v29  ;;  %v1590_v42 = vsel %vm542_vm3, %v1586_v29, %v1583_v23  ;;  %v1591_v50 = vmul.f32 %v1589_v7, %v4166_v37  ;;  %v3452_v12 = vpack.i.bf16 %v1600_v19, %v1599_v40  ;;  %v5124_v7 = vld [vmem:[#allocation11_spill] sm:$0xff]  ;;  %v5125_v40 = vld [vmem:[#allocation12_spill] sm:$0xff] }
 0x523   :  { %v1601_v14 = vmul.f32 %v1551_v5, %v5119_v28  ;;  %v1602_v11 = vmul.f32 %v1554_v51, %v5120_v38  ;;  %v1593_v10 = vmul.f32 %v1587_v52, %v5121_v6  ;;  %v1594_v3 = vmul.f32 %v1590_v42, %v5122_v41  ;;  %v5126_v42 = vld [vmem:[#allocation10_spill] sm:$0xff] }
 0x524   :  { %v3462_v4 = vpack.i.bf16 %v1592_v59, %v1591_v50  ;;  %v1536_v37 = vrot.slane %v4587_v61, 3  ;;  %v1560_v5 = vrot.slane %v4587_v61, 5  ;;  %v1538_v51 = vrot.slane %v4605_v15, 3 }
 0x525   :  { %3448 = vrot.lane.b32.xlu0 %v3447_v21, %s3712_s0  ;;  %3458 = vrot.lane.b32.xlu1 %v3457_v47, %s3712_s0  ;;  %v3467_v57 = vpack.i.bf16 %v1602_v11, %v1601_v14  ;;  %v3472_v60 = vpack.i.bf16 %v1594_v3, %v1593_v10  ;;  %v1535_v35 = vrot.slane %v4589_v27, 3  ;;  %v1559_v34 = vrot.slane %v4589_v27, 5 }
 0x526   :  { %v1561_v0 = vrot.slane %v4592_v62, 5  ;;  %v1537_v28 = vrot.slane %v4592_v62, 3 }
 0x527   :  { %v1541_v36 = vsel %vm391_vm4, %v1535_v35, %v1536_v37  ;;  %v4695_v23 = vsel %vm466_vm5, %v1559_v34, %v1560_v5  ;;  %v4700_v29 = vsel %vm391_vm4, %v1538_v51, %v1535_v35  ;;  %v4704_v44 = vsel %vm466_vm5, %v1562_v33, %v1559_v34 }
 0x528   :  { %v1544_v19 = vmul.f32 %v1541_v36, %v5123_v54  ;;  %v1568_v21 = vmul.f32 %v4695_v23, %v5124_v7  ;;  %v1543_v52 = vmul.f32 %v4700_v29, %v5125_v40  ;;  %v1567_v50 = vmul.f32 %v4704_v44, %v5126_v42  ;;  %v5127_v54 = vld [vmem:[#allocation14_spill] sm:$0xff] }
 0x529   :  { %3453 = vrot.lane.b32.xlu0 %v3452_v12, %s3712_s0  ;;  %3463 = vrot.lane.b32.xlu1 %v3462_v4, %s3712_s0  ;;  %v1564_v12 = vsel %vm466_vm5, %v1560_v5, %v1561_v0  ;;  %v4718_v6 = vsel %vm466_vm5, %v1561_v0, %v1562_v33  ;;  %v5128_v0 = vld [vmem:[#allocation15_spill] sm:$0xff] }
 0x52a   :  { %v1569_v7 = vmul.f32 %v1564_v12, %v5127_v54  ;;  %v1570_v40 = vmul.f32 %v4718_v6, %v5128_v0  ;;  %v5132_v54 = vld [vmem:[#allocation19_spill] sm:$0xff] }
 0x52d   :  { %3468 = vrot.lane.b32.xlu0 %v3467_v57, %s3712_s0  ;;  %3473 = vrot.lane.b32.xlu1 %v3472_v60, %s3712_s0 }
 0x593   :  { %v3439_v47 = vpop.permute.xlu0 %3438  ;;  %v3444_v59 = vpop.permute.xlu1 %3443 }
 0x594   :  { %v3441_v14 = vunpack.i.h.bf16 %v3439_v47  ;;  %v3440_v4 = vunpack.i.l.bf16 %v3439_v47  ;;  %v3446_v38 = vunpack.i.h.bf16 %v3444_v59  ;;  %v3445_v11 = vunpack.i.l.bf16 %v3444_v59 }
 0x595   :  { %v1540_v47 = vsel %vm391_vm4, %v1536_v37, %v1537_v28 }
 0x596   :  { %v1671_v10 = vsel %vm727_vm6, %v1543_v52, %v3445_v11  ;;  %v1672_v41 = vsel %vm727_vm6, %v1544_v19, %v3446_v38  ;;  %v1675_v3 = vsel %vm727_vm6, %v1567_v50, %v3440_v4  ;;  %v1676_v57 = vsel %vm727_vm6, %v1568_v21, %v3441_v14  ;;  %v3597_v19 = vld [vmem:[%s5048_s12 + $0x108] sm:$0xff]  }
 0x597   :  { %v1687_v60 = vpack.c.bf16 %v1672_v41, %v1671_v10  ;;  %v3449_v5 = vpop.permute.xlu0 %3448  ;;  %v3459_v35 = vpop.permute.xlu1 %3458  ;;  %v1688_v34 = vpack.c.bf16 %v1676_v57, %v1675_v3  ;;  %v1539_v21 = vsel %vm391_vm4, %v1537_v28, %v1538_v51  ;;  %v5129_v14 = vld [vmem:[#allocation18_spill] sm:$0xff]  ;;  %v1596_v41 = vmul.f32 %v1540_v47, %v4284_v25  ;;  %v5130_v3 = vld [vmem:[#allocation16_spill] sm:$0xff]  ;;  %v5131_v51 = vld [vmem:[#allocation17_spill] sm:$0xff] }
 0x598   :  { %v3451_v59 = vunpack.i.h.bf16 %v3449_v5  ;;  %v3450_v33 = vunpack.i.l.bf16 %v3449_v5  ;;  %v3461_v52 = vunpack.i.h.bf16 %v3459_v35  ;;  %v3460_v42 = vunpack.i.l.bf16 %v3459_v35 }
 0x599   :  { %2030 = vmatprep.mubr.bf16.mxu0 %v1688_v34  ;;  %v1595_v4 = vmul.f32 %v1541_v36, %v5129_v14  ;;  %v1545_v55 = vmul.f32 %v1540_v47, %v5130_v3  ;;  %v1546_v28 = vmul.f32 %v1539_v21, %v5131_v51  ;;  %v3599_v36 = vld [vmem:[%s5048_s12 + $0x110] sm:$0xff]   ;;  %v1604_v25 = vmul.f32 %v1564_v12, %v5132_v54  ;;  %v3627_v54 = vld [vmem:[%s5052_s16 + $0x44] ss:$8 sps:$4 sm:$0xff]  }
 0x59a   :  { %2031 = vmatmul.mubr.bf16.vlgmr.msra.gmra.mrb[28].mxu0 %v1687_v60  ;;  %v1677_v50 = vsel %vm727_vm6, %v1569_v7, %v3450_v33  ;;  %v1678_v37 = vsel %vm727_vm6, %v1570_v40, %v3451_v59  ;;  %v1598_v12 = vmul.f32 %v4700_v29, %v4338_v9  ;;  %v1605_v29 = vmul.f32 %v4718_v6, %v4302_v48  ;;  %v3603_v48 = vld [vmem:[%s5050_s14 + $0x4] ss:$8 sps:$4 sm:$0xff]   ;;  %v3612_v51 = vld [vmem:[%s5050_s14 + $0x34] ss:$8 sps:$4 sm:$0xff]  }
 0x59b   :  { %v3454_v38 = vpop.permute.xlu0 %3453  ;;  %v3464_v11 = vpop.permute.xlu1 %3463  ;;  %3367 = vmatpush3.bf16.msra.mxu0 %v4625_v45  ;;  %v1693_v10 = vpack.c.bf16 %v1678_v37, %v1677_v50  ;;  %v1673_v34 = vsel %vm727_vm6, %v1545_v55, %v3460_v42  ;;  %v1674_v45 = vsel %vm727_vm6, %v1546_v28, %v3461_v52  ;;  %v1603_v52 = vmul.f32 %v4695_v23, %v4286_v26  ;;  %v3609_v6 = vld [vmem:[%s5050_s14 + $0x24] ss:$8 sps:$4 sm:$0xff]   ;;  %v3610_v55 = vld [vmem:[%s5050_s14 + $0x30] ss:$8 sps:$4 sm:$0xff]   ;;  %v3613_v28 = vld [vmem:[%s5052_s16] ss:$8 sps:$4 sm:$0xff]  }
 0x59c   :  { %v3456_v57 = vunpack.i.h.bf16 %v3454_v38  ;;  %v3455_v5 = vunpack.i.l.bf16 %v3454_v38  ;;  %v3466_v60 = vunpack.i.h.bf16 %v3464_v11  ;;  %v3465_v35 = vunpack.i.l.bf16 %v3464_v11  ;;  %3368 = vmatprep.subr.bf16.mxu0 %v3597_v19 }
 0x59d   :  { %2038 = vmatprep.mubr.bf16.mxu0 %v1693_v10  ;;  %v1692_v14 = vpack.c.bf16 %v1674_v45, %v1673_v34  ;;  %v3624_v34 = vld [vmem:[%s5052_s16 + $0x34] ss:$8 sps:$4 sm:$0xff]   ;;  %v3622_v45 = vld [vmem:[%s5052_s16 + $0x30] ss:$8 sps:$4 sm:$0xff]  }
 0x59e   :  { %v1680_v7 = vsel %vm727_vm6, %v4587_v61, %v3466_v60  ;;  %v1679_v47 = vsel %vm727_vm6, %v4589_v27, %v3465_v35  ;;  %v1683_v59 = vsel %vm727_vm6, %v1595_v4, %v3455_v5  ;;  %v1684_v33 = vsel %vm727_vm6, %v1596_v41, %v3456_v57  ;;  %v3600_v4 = vld [vmem:[%s5048_s12 + $0x118] sm:$0xff]   ;;  %v3615_v57 = vld [vmem:[%s5052_s16 + $0x4] ss:$8 sps:$4 sm:$0xff]  }
 0x59f   :  { %v1689_v0 = vpack.c.bf16 %v1680_v7, %v1679_v47  ;;  %v3469_v40 = vpop.permute.xlu0 %3468  ;;  %v3474_v50 = vpop.permute.xlu1 %3473  ;;  %3369 = vmatpush3.bf16.msra.mxu0 %v3597_v19  ;;  %v1690_v37 = vpack.c.bf16 %v1684_v33, %v1683_v59  ;;  %v1597_v27 = vmul.f32 %v1539_v21, %v4336_v63  ;;  %v1691_v19 = vpack.c.bf16 %v1604_v25, %v1603_v52  ;;  %v3618_v5 = vld [vmem:[%s5052_s16 + $0x14] ss:$8 sps:$4 sm:$0xff]   ;;  %v3616_v60 = vld [vmem:[%s5052_s16 + $0x10] ss:$8 sps:$4 sm:$0xff]   ;;  %v3621_v35 = vld [vmem:[%s5052_s16 + $0x24] ss:$8 sps:$4 sm:$0xff]  }
 0x5a0   :  { %v3471_v42 = vunpack.i.h.bf16 %v3469_v40  ;;  %v3470_v61 = vunpack.i.l.bf16 %v3469_v40  ;;  %3370 = vmatprep.subr.bf16.mxu0 %v3599_v36  ;;  %v3476_v38 = vunpack.i.h.bf16 %v3474_v50  ;;  %v3475_v11 = vunpack.i.l.bf16 %v3474_v50  ;;  %2494 = vmatprep.subr.bf16.mxu1 %v3615_v57  ;;  %v3625_v25 = vld [vmem:[%s5052_s16 + $0x40] ss:$8 sps:$4 sm:$0xff]   ;;  %v3630_v7 = vld [vmem:[%s5052_s16 + $0x54] ss:$8 sps:$4 sm:$0xff]   ;;  %v3628_v47 = vld [vmem:[%s5052_s16 + $0x50] ss:$8 sps:$4 sm:$0xff]  }
 0x5a1   :  { %2079 = vmatprep.mubr.bf16.mxu1 %v1690_v37  ;;  %v1606_v63 = vmul.f32 %v4704_v44, %v4300_v46  ;;  %v3601_v46 = vld [vmem:[%s5050_s14] ss:$8 sps:$4 sm:$0xff]   ;;  %v3633_v59 = vld [vmem:[%s5052_s16 + $0x64] ss:$8 sps:$4 sm:$0xff]   ;;  %v3634_v40 = vld [vmem:[%s5052_s16 + $0x70] ss:$8 sps:$4 sm:$0xff]  }
 0x5a2   :  { %2039 = vmatmul.mubr.bf16.gmra.mrb[32].mxu0 %v1692_v14  ;;  %2080 = vmatmul.mubr.bf16.vlgmr.msra.gmra.mrb[24].mxu1 %v1689_v0  ;;  %v1685_v26 = vsel %vm727_vm6, %v1597_v27, %v3470_v61  ;;  %v1686_v9 = vsel %vm727_vm6, %v1598_v12, %v3471_v42  ;;  %v1681_v21 = vsel %vm727_vm6, %v4592_v62, %v3475_v11  ;;  %v3606_v62 = vld [vmem:[%s5050_s14 + $0x14] ss:$8 sps:$4 sm:$0xff]   ;;  %v3607_v44 = vld [vmem:[%s5050_s14 + $0x20] ss:$8 sps:$4 sm:$0xff]   ;;  %v3639_v50 = vld [vmem:[%s5052_s16 + $0x84] ss:$8 sps:$4 sm:$0xff]  }
 0x5a3   :  { %3371 = vmatpush3.bf16.msra.mxu0 %v3599_v36  ;;  %3374 = vmatprep.mubr.msk.bf16.mxu0 %vm727_vm6, %v1691_v19  ;;  %v1695_v23 = vpack.c.bf16 %v1686_v9, %v1685_v26  ;;  %v1682_v10 = vsel %vm727_vm6, %v4605_v15, %v3476_v38  ;;  %v1696_v41 = vpack.c.bf16 %v1606_v63, %v1605_v29  ;;  %v3604_v15 = vld [vmem:[%s5050_s14 + $0x10] ss:$8 sps:$4 sm:$0xff]   ;;  %v3619_v36 = vld [vmem:[%s5052_s16 + $0x20] ss:$8 sps:$4 sm:$0xff]   ;;  %v3636_v0 = vld [vmem:[%s5052_s16 + $0x74] ss:$8 sps:$4 sm:$0xff]  }
 0x5a4   :  { %3372 = vmatprep.subr.bf16.mxu0 %v3600_v4  ;;  %v1694_v3 = vpack.c.bf16 %v1682_v10, %v1681_v21  ;;  %2495 = vmatpush1.bf16.msra.mxu1 %v3613_v28  ;;  %v3631_v33 = vld [vmem:[%s5052_s16 + $0x60] ss:$8 sps:$4 sm:$0xff]   ;;  %v3642_v52 = vld [vmem:[%s5052_s16 + $0x94] ss:$8 sps:$4 sm:$0xff]   ;;  %v3640_v12 = vld [vmem:[%s5052_s16 + $0x90] ss:$8 sps:$4 sm:$0xff]  }
 0x5a5   :  { %2087 = vmatprep.mubr.bf16.mxu1 %v1695_v23  ;;  %2496 = vmatprep.subr.bf16.mxu1 %v3618_v5  ;;  %v3637_v37 = vld [vmem:[%s5052_s16 + $0x80] ss:$8 sps:$4 sm:$0xff]   ;;  %v3645_v42 = vld [vmem:[%s5052_s16 + $0xa4] ss:$8 sps:$4 sm:$0xff]   ;;  %v3648_v14 = vld [vmem:[%s5052_s16 + $0xb4] ss:$8 sps:$4 sm:$0xff]  }
 0x5a6   :  { %v3643_v61 = vld [vmem:[%s5052_s16 + $0xa0] ss:$8 sps:$4 sm:$0xff]   ;;  %v3646_v27 = vld [vmem:[%s5052_s16 + $0xb0] ss:$8 sps:$4 sm:$0xff]  }
 0x5a7   :  { %3373 = vmatpush3.bf16.msra.mxu0 %v3600_v4  ;;  %v3651_v4 = vld [vmem:[%s5052_s16 + $0xc4] ss:$8 sps:$4 sm:$0xff]   ;;  %v3649_v38 = vld [vmem:[%s5052_s16 + $0xc0] ss:$8 sps:$4 sm:$0xff]  }
 0x5a8   :  { %2217 = vmatprep.subr.bf16.mxu0 %v3603_v48  ;;  %2497 = vmatpush1.bf16.msra.mxu1 %v3616_v60  ;;  %v3042_v29 = vld [vmem:[%s5049_s13] ss:$0 sm:$0xff] }
 0x5a9   :  { %2498 = vmatprep.subr.bf16.mxu1 %v3621_v35 }
 0x5aa   :  { %2088 = vmatmul.mubr.bf16.gmra.mrb[28].mxu1 %v1694_v3  ;;  %3375 = vmatmul.mubr.msk.bf16.vlgmr.msra.gmra.mrb[36].mxu0 %vm727_vm6, %v1696_v41 }
 0x5ab   :  { %2249 = vmatprep.mubr.bf16.mxu0 %v5115_v24  ;;  %2218 = vmatpush1.bf16.msra.mxu0 %v3601_v46 }
 0x5ac   :  { %2219 = vmatprep.subr.bf16.mxu0 %v3606_v62  ;;  %2499 = vmatpush1.bf16.msra.mxu1 %v3619_v36 }
 0x5ad   :  { %2500 = vmatprep.subr.bf16.mxu1 %v3624_v34 }
 0x5af   :  { %2220 = vmatpush1.bf16.msra.mxu0 %v3604_v15 }
 0x5b0   :  { %2221 = vmatprep.subr.bf16.mxu0 %v3609_v6  ;;  %2501 = vmatpush1.bf16.msra.mxu1 %v3622_v45 }
 0x5b1   :  { %2502 = vmatprep.subr.bf16.mxu1 %v3627_v54 }
 0x5b3   :  { %2222 = vmatpush1.bf16.msra.mxu0 %v3607_v44 }
 0x5b4   :  { %2223 = vmatprep.subr.bf16.mxu0 %v3612_v51  ;;  %2503 = vmatpush1.bf16.msra.mxu1 %v3625_v25 }
 0x5b5   :  { %2504 = vmatprep.subr.bf16.mxu1 %v3630_v7 }
 0x5b7   :  { %2224 = vmatpush1.bf16.msra.mxu0 %v3610_v55 }
 0x5b8   :  { %2505 = vmatpush1.bf16.msra.mxu1 %v3628_v47 }
 0x5b9   :  { %2506 = vmatprep.subr.bf16.mxu1 %v3633_v59 }
 0x5bc   :  { %2507 = vmatpush1.bf16.msra.mxu1 %v3631_v33 }
 0x5bd   :  { %2508 = vmatprep.subr.bf16.mxu1 %v3636_v0 }
 0x5c0   :  { %2509 = vmatpush1.bf16.msra.mxu1 %v3634_v40 }
 0x5c1   :  { %2510 = vmatprep.subr.bf16.mxu1 %v3639_v50 }
 0x5c4   :  { %2511 = vmatpush1.bf16.msra.mxu1 %v3637_v37 }
 0x5c5   :  { %2512 = vmatprep.subr.bf16.mxu1 %v3642_v52 }
 0x5c8   :  { %2513 = vmatpush1.bf16.msra.mxu1 %v3640_v12 }
 0x5c9   :  { %2514 = vmatprep.subr.bf16.mxu1 %v3645_v42 }
 0x5cc   :  { %2515 = vmatpush1.bf16.msra.mxu1 %v3643_v61 }
 0x5cd   :  { %2516 = vmatprep.subr.bf16.mxu1 %v3648_v14 }
 0x5d0   :  { %2517 = vmatpush1.bf16.msra.mxu1 %v3646_v27 }
 0x5d1   :  { %2518 = vmatprep.subr.bf16.mxu1 %v3651_v4 }
 0x5d4   :  { %2519 = vmatpush1.bf16.msra.mxu1 %v3649_v38 }
 0x66d   :  { %v3281_v11 = vpop.f32.mrb[28].mxu0 }
 0x66e   :  { %v3282_v19 = vpop.f32.mrb[29].mxu0 }
 0x66f   :  { %v3283_v26 = vadd.f32 %v3282_v19, %v3281_v11  ;;  %v3284_v9 = vpop.f32.mrb[30].mxu0 }
 0x670   :  { %v3285_v23 = vpop.f32.mrb[31].mxu0 }
 0x671   :  { %v3286_v63 = vadd.f32 %v3285_v23, %v3284_v9  ;;  %v2033_v46 = vadd.f32 %v3283_v26, %v3042_v29  ;;  %v3652_v26 = vld [vmem:[%s5052_s16 + $0xd0] ss:$8 sps:$4 sm:$0xff]   ;;  %v3654_v9 = vld [vmem:[%s5052_s16 + $0xd4] ss:$8 sps:$4 sm:$0xff]   ;;  %v3655_v23 = vld [vmem:[%s5052_s16 + $0xe0] ss:$8 sps:$4 sm:$0xff]  }
 0x672   :  { %2520 = vmatprep.subr.bf16.mxu1 %v3654_v9 }
 0x673   :  { %v2036_v51 = vadd.f32 %v3286_v63, %v3042_v29  ;;  %2521 = vmatpush1.bf16.msra.mxu1 %v3652_v26  ;;  %v3657_v63 = vld [vmem:[%s5052_s16 + $0xe4] ss:$8 sps:$4 sm:$0xff]  }
 0x674   :  { %2522 = vmatprep.subr.bf16.mxu1 %v3657_v63 }
 0x675   :  { %v3287_v21 = vpop.f32.mrb[32].mxu0  ;;  %v3309_v10 = vpop.f32.mrb[24].mxu1 }
 0x676   :  { %v3288_v41 = vpop.f32.mrb[33].mxu0  ;;  %v3310_v3 = vpop.f32.mrb[25].mxu1 }
 0x677   :  { %v3289_v48 = vadd.f32 %v3288_v41, %v3287_v21  ;;  %v3311_v62 = vadd.f32 %v3310_v3, %v3309_v10  ;;  %v3290_v15 = vpop.f32.mrb[34].mxu0  ;;  %v3312_v44 = vpop.f32.mrb[26].mxu1  ;;  %2523 = vmatpush1.bf16.msra.mxu1 %v3655_v23  ;;  %v2159_v21 = vld [vmem:[%s5051_s15] sm:$0x3] }
 0x678   :  { %v3291_v6 = vpop.f32.mrb[35].mxu0  ;;  %v3313_v55 = vpop.f32.mrb[27].mxu1  ;;  %v2164_v10 = vrot.slane %v2159_v21, %v4020_v58  ;;  %v2168_v41 = vrot.slane %v2159_v21, %v4014_v56  ;;  %v2556_v56 = vld [vmem:[%s5054_s18 + $0x8] sm:$0xff] }
 0x679   :  { %v3292_v28 = vadd.f32 %v3291_v6, %v3290_v15  ;;  %v3314_v57 = vadd.f32 %v3313_v55, %v3312_v44  ;;  %v2082_v5 = vadd.f32 %v3311_v62, %v2033_v46  ;;  %v2041_v54 = vadd.f32 %v3289_v48, %v3042_v29 }
 0x67b   :  { %v2085_v60 = vadd.f32 %v3314_v57, %v2036_v51  ;;  %v2044_v40 = vadd.f32 %v3292_v28, %v3042_v29  ;;  %v3660_v29 = vld [vmem:[%s5052_s16 + $0xf4] ss:$8 sps:$4 sm:$0xff]  }
 0x67c   :  { %2524 = vmatprep.subr.bf16.mxu1 %v3660_v29 }
 0x67d   :  { %v3315_v35 = vpop.f32.mrb[28].mxu1  ;;  %v3376_v36 = vpop.f32.mrb[36].mxu0 }
 0x67e   :  { %v3316_v34 = vpop.f32.mrb[29].mxu1  ;;  %v2130_v45 = vpop.f32.mrb[37].mxu0 }
 0x67f   :  { %v3317_v25 = vadd.f32 %v3316_v34, %v3315_v35  ;;  %v2131_v7 = vadd.f32 %v2130_v45, %v2082_v5  ;;  %v3318_v47 = vpop.f32.mrb[30].mxu1  ;;  %v3377_v59 = vpop.f32.mrb[38].mxu0 }
 0x680   :  { %v3319_v33 = vpop.f32.mrb[31].mxu1  ;;  %v2133_v0 = vpop.f32.mrb[39].mxu0 }
 0x681   :  { %v2090_v50 = vadd.f32 %v3317_v25, %v2041_v54  ;;  %v3320_v37 = vadd.f32 %v3319_v33, %v3318_v47  ;;  %v2134_v52 = vadd.f32 %v2133_v0, %v2085_v60  ;;  %v2145_v42 = vmax.f32 %v2131_v7, 0.0 }
 0x683   :  { %v2139_v12 = vadd.f32 %v3376_v36, %v2090_v50  ;;  %v2093_v61 = vadd.f32 %v3320_v37, %v2044_v40  ;;  %v2146_v14 = vmax.f32 %v2134_v52, 0.0 }
 0x685   :  { %v2142_v27 = vadd.f32 %v3377_v59, %v2093_v61  ;;  %v2149_v4 = vpack.c.bf16 %v2146_v14, %v2145_v42  ;;  %v2147_v38 = vmax.f32 %v2139_v12, 0.0  ;;  %v2555_v14 = vld [vmem:[%s5054_s18] sm:$0xff] }
 0x687   :  { %v2148_v11 = vmax.f32 %v2142_v27, 0.0  ;;  %3089 = vmatmul.mubr.msk.bf16.vlgmr.msra.gmra.mrb[40].mxu0 %vm727_vm6, %v2149_v4  ;;  %v2557_v4 = vld [vmem:[%s5054_s18 + $0x10] sm:$0xff] }
 0x688   :  { %2259 = vmatprep.mubr.bf16.mxu0 %v5115_v24 }
 0x689   :  { %v2150_v19 = vpack.c.bf16 %v2148_v11, %v2147_v38  ;;  %v2558_v11 = vld [vmem:[%s5054_s18 + $0x18] sm:$0xff] }
 0x68f   :  { %3090 = vmatmul.mubr.msk.bf16.gmra.mrb[44].mxu0 %vm727_vm6, %v2150_v19 }
 0x690   :  { %2611 = vmatprep.mubr.bf16.mxu0 %v5115_v24  ;;  %v3658_v24 = vld [vmem:[%s5052_s16 + $0xf0] ss:$8 sps:$4 sm:$0xff]  }
 0x691   :  { %2525 = vmatpush1.bf16.msra.mxu1 %v3658_v24 }
 0x75a   :  { %v2251_v3 = vpop.f32.mrb[40].mxu0 }
 0x75b   :  { %v2252_v46 = vadd.f32 %v2251_v3, %v2164_v10  ;;  %v2253_v48 = vpop.f32.mrb[41].mxu0 }
 0x75c   :  { %v2254_v62 = vadd.f32 %v2253_v48, %v2168_v41  ;;  %v2255_v15 = vpop.f32.mrb[42].mxu0 }
 0x75d   :  { %v2270_v44 = vadd.f32 %v2252_v46, %v1335_v2  ;;  %v2256_v6 = vadd.f32 %v2255_v15, %v2164_v10  ;;  %v2257_v55 = vpop.f32.mrb[43].mxu0 }
 0x75e   :  { %v2271_v51 = vadd.f32 %v2254_v62, %v1336_v22  ;;  %v2258_v28 = vadd.f32 %v2257_v55, %v2168_v41  ;;  %v2561_v55 = vld [vmem:[%s5054_s18 + $0x30] sm:$0xff] }
 0x75f   :  { %v2272_v57 = vadd.f32 %v2256_v6, %v1337_v20  ;;  %v2278_v60 = vmax.f32 %v2270_v44, 0.0  ;;  %v2559_v44 = vld [vmem:[%s5054_s18 + $0x20] sm:$0xff] }
 0x760   :  { %v2273_v5 = vadd.f32 %v2258_v28, %v1338_v17  ;;  %v2279_v36 = vmax.f32 %v2271_v51, 0.0  ;;  %v2560_v28 = vld [vmem:[%s5054_s18 + $0x28] sm:$0xff] }
 0x761   :  { %v2280_v35 = vmax.f32 %v2272_v57, 0.0 }
 0x762   :  { %v2281_v34 = vmax.f32 %v2273_v5, 0.0  ;;  %v2261_v45 = vpop.f32.mrb[44].mxu0  ;;  %v2562_v5 = vld [vmem:[%s5054_s18 + $0x38] sm:$0xff] }
 0x763   :  { %v2286_v54 = vpack.c.bf16 %v2280_v35, %v2278_v60  ;;  %v2262_v53 = vadd.f32 %v2261_v45, %v2164_v10  ;;  %v2263_v2 = vpop.f32.mrb[45].mxu0 }
 0x764   :  { %v2264_v25 = vadd.f32 %v2263_v2, %v2168_v41  ;;  %v2265_v7 = vpop.f32.mrb[46].mxu0  ;;  %v2287_v47 = vpack.c.bf16 %v2281_v34, %v2279_v36  ;;  %v3661_v2 = vld [vmem:[%s5056_s20 + $0x40] sm:$0xff]  }
 0x765   :  { %v2274_v49 = vadd.f32 %v2262_v53, %v1339_v13  ;;  %v2266_v22 = vadd.f32 %v2265_v7, %v2164_v10  ;;  %v2267_v18 = vpop.f32.mrb[47].mxu0  ;;  %v3662_v7 = vld [vmem:[%s5056_s20] sm:$0xff]  }
 0x766   :  { %v2275_v30 = vadd.f32 %v2264_v25, %v1340_v39  ;;  %v2268_v20 = vadd.f32 %v2267_v18, %v2168_v41  ;;  %2526 = vmatprep.mubr.bf16.mxu1 %v2287_v47  ;;  %v2327_v39 = vrot.slane %v2322_v31, %v4020_v58  ;;  %v2575_v25 = vld [vmem:[%s5055_s19] sm:$0x1]  ;;  %v3663_v47 = vld [vmem:[%s5056_s20 + $0x48] sm:$0xff]   ;;  %v3666_v18 = vld [vmem:[%s5056_s20 + $0x10] sm:$0xff]   ;;  %v3713_v31 = vmov 0.0  }
 0x767   :  { %v2276_v17 = vadd.f32 %v2266_v22, %v1341_v8  ;;  %2527 = vmatmul.mubr.bf16.vlgmr.msra.gmra.mrb[32].mxu1 %v2286_v54  ;;  %v2282_v33 = vmax.f32 %v2274_v49, 0.0  ;;  %v3664_v49 = vld [vmem:[%s5056_s20 + $0x8] sm:$0xff]   ;;  %v3665_v22 = vld [vmem:[%s5056_s20 + $0x50] sm:$0xff]  }
 0x768   :  { %v2277_v59 = vadd.f32 %v2268_v20, %v1342_v43  ;;  %v2283_v40 = vmax.f32 %v2275_v30, 0.0  ;;  %v3667_v30 = vld [vmem:[%s5056_s20 + $0x58] sm:$0xff]  }
 0x769   :  { %v2284_v0 = vmax.f32 %v2276_v17, 0.0  ;;  %v3668_v20 = vld [vmem:[%s5056_s20 + $0x18] sm:$0xff]   ;;  %v3669_v17 = vld [vmem:[%s5056_s20 + $0x60] sm:$0xff]  }
 0x76a   :  { %v2285_v50 = vmax.f32 %v2277_v59, 0.0  ;;  %v3670_v59 = vld [vmem:[%s5056_s20 + $0x20] sm:$0xff]  }
 0x76b   :  { %v2288_v16 = vpack.c.bf16 %v2284_v0, %v2282_v33  ;;  %v3671_v33 = vld [vmem:[%s5056_s20 + $0x68] sm:$0xff]  }
 0x76c   :  { %v2289_v13 = vpack.c.bf16 %v2285_v50, %v2283_v40  ;;  %v3672_v0 = vld [vmem:[%s5056_s20 + $0x28] sm:$0xff]   ;;  %v3673_v40 = vld [vmem:[%s5056_s20 + $0x70] sm:$0xff]  }
 0x76d   :  { %v3674_v50 = vld [vmem:[%s5056_s20 + $0x30] sm:$0xff]  }
 0x76e   :  { %2536 = vmatprep.mubr.bf16.mxu1 %v2289_v13  ;;  %v3676_v13 = vld [vmem:[%s5056_s20 + $0x38] sm:$0xff]  }
 0x76f   :  { %2537 = vmatmul.mubr.bf16.gmra.mrb[36].mxu1 %v2288_v16  ;;  %v3675_v16 = vld [vmem:[%s5056_s20 + $0x78] sm:$0xff]  }
 0x83a   :  { %v2528_v8 = vpop.f32.mrb[32].mxu1 }
 0x83b   :  { %v2529_v37 = vadd.f32 %v2528_v8, %v2327_v39  ;;  %v2530_v1 = vpop.f32.mrb[33].mxu1 }
 0x83c   :  { %v2531_v43 = vadd.f32 %v2530_v1, %v2331_v32  ;;  %v2532_v52 = vpop.f32.mrb[34].mxu1  ;;  %v3677_v1 = vld [vmem:[%s5058_s22] sm:$0xff]  }
 0x83d   :  { %v2547_v12 = vmax.f32 %v2529_v37, 0.0  ;;  %v2533_v42 = vadd.f32 %v2532_v52, %v2327_v39  ;;  %v2534_v61 = vpop.f32.mrb[35].mxu1 }
 0x83e   :  { %v2548_v27 = vmax.f32 %v2531_v43, 0.0  ;;  %v2535_v58 = vadd.f32 %v2534_v61, %v2331_v32  ;;  %v3680_v61 = vld [vmem:[%s5058_s22 + $0x18] sm:$0xff]  }
 0x83f   :  { %v2549_v38 = vmax.f32 %v2533_v42, 0.0  ;;  %v2563_v26 = vmul.f32 %v2555_v14, %v2547_v12  ;;  %v3678_v12 = vld [vmem:[%s5058_s22 + $0x8] sm:$0xff]   ;;  %v3679_v42 = vld [vmem:[%s5058_s22 + $0x10] sm:$0xff]  }
 0x840   :  { %v2550_v19 = vmax.f32 %v2535_v58, 0.0  ;;  %v2564_v23 = vmul.f32 %v2556_v56, %v2548_v27  ;;  %v3124_v27 = vld [vmem:[%s5057_s21] ss:$0 sm:$0xff] }
 0x841   :  { %v2565_v9 = vmul.f32 %v2557_v4, %v2549_v38 }
 0x842   :  { %v2566_v63 = vmul.f32 %v2558_v11, %v2550_v19  ;;  %v2538_v24 = vpop.f32.mrb[36].mxu1 }
 0x843   :  { %v2571_v29 = vpack.c.bf16 %v2565_v9, %v2563_v26  ;;  %v2539_v21 = vadd.f32 %v2538_v24, %v2327_v39  ;;  %v2540_v10 = vpop.f32.mrb[37].mxu1 }
 0x844   :  { %v2541_v41 = vadd.f32 %v2540_v10, %v2331_v32  ;;  %v2542_v3 = vpop.f32.mrb[38].mxu1  ;;  %v2572_v46 = vpack.c.bf16 %v2566_v63, %v2564_v23 }
 0x845   :  { %v2551_v48 = vmax.f32 %v2539_v21, 0.0  ;;  %v2543_v62 = vadd.f32 %v2542_v3, %v2327_v39  ;;  %v2544_v15 = vpop.f32.mrb[39].mxu1 }
 0x846   :  { %v2552_v6 = vmax.f32 %v2541_v41, 0.0  ;;  %v2545_v51 = vadd.f32 %v2544_v15, %v2331_v32  ;;  %2579 = vmatprep.subr.bf16.mxu0 %v2572_v46 }
 0x847   :  { %v2553_v57 = vmax.f32 %v2543_v62, 0.0  ;;  %2580 = vmatpush1.bf16.msra.mxu0 %v2571_v29  ;;  %v2567_v35 = vmul.f32 %v2559_v44, %v2551_v48  ;;  %v3141_v29 = vld [vmem:[#allocation2] ss:$0 sm:$0xff] }
 0x848   :  { %v2554_v60 = vmax.f32 %v2545_v51, 0.0  ;;  %v2568_v34 = vmul.f32 %v2560_v28, %v2552_v6 }
 0x849   :  { %v2569_v36 = vmul.f32 %v2561_v55, %v2553_v57 }
 0x84a   :  { %v2570_v45 = vmul.f32 %v2562_v5, %v2554_v60 }
 0x84b   :  { %v2573_v54 = vpack.c.bf16 %v2569_v36, %v2567_v35 }
 0x84c   :  { %v2574_v53 = vpack.c.bf16 %v2570_v45, %v2568_v34 }
 0x84e   :  { %2581 = vmatprep.subr.bf16.mxu0 %v2574_v53 }
 0x84f   :  { %2582 = vmatpush1.bf16.msra.mxu0 %v2573_v54 }
 0x850   :  { %3327 = vmatprep.subr.bf16.mxu0 %v3661_v2 }
 0x852   :  { %3123 = vmatmul.mubr.msk.bf16.vlgmr.msra.gmra.mrb[48].mxu0 %vm133_vm0, %v2575_v25 }
 0x853   :  { %3328 = vmatpush3.bf16.msra.mxu0 %v3662_v7 }
 0x854   :  { %3329 = vmatprep.subr.bf16.mxu0 %v3663_v47 }
 0x857   :  { %3330 = vmatpush3.bf16.msra.mxu0 %v3664_v49 }
 0x858   :  { %3331 = vmatprep.subr.bf16.mxu0 %v3665_v22 }
 0x85b   :  { %3332 = vmatpush3.bf16.msra.mxu0 %v3666_v18 }
 0x85c   :  { %3333 = vmatprep.subr.bf16.mxu0 %v3667_v30 }
 0x85f   :  { %3334 = vmatpush3.bf16.msra.mxu0 %v3668_v20 }
 0x860   :  { %3335 = vmatprep.subr.bf16.mxu0 %v3669_v17 }
 0x863   :  { %3336 = vmatpush3.bf16.msra.mxu0 %v3670_v59 }
 0x864   :  { %3337 = vmatprep.subr.bf16.mxu0 %v3671_v33 }
 0x867   :  { %3338 = vmatpush3.bf16.msra.mxu0 %v3672_v0 }
 0x868   :  { %3339 = vmatprep.subr.bf16.mxu0 %v3673_v40 }
 0x86b   :  { %3340 = vmatpush3.bf16.msra.mxu0 %v3674_v50 }
 0x86c   :  { %3341 = vmatprep.subr.bf16.mxu0 %v3675_v16 }
 0x86f   :  { %3342 = vmatpush3.bf16.msra.mxu0 %v3676_v13 }
 0x870   :  { %3378 = vmatprep.subr.bf16.mxu0 %v3713_v31 }
 0x925   :  { %v2613_v39 = vpop.f32.mrb[48].mxu0 }
 0x926   :  { %v2615_v32 = vpop.f32.mrb[49].mxu0  ;;  %v2620_v43 = vpack.c.bf16 %v2613_v39, %v2613_v39 }
 0x927   :  { %v2621_v8 = vpack.c.bf16 %v2615_v32, %v2615_v32  ;;  %v2617_v37 = vpop.f32.mrb[50].mxu0 }
 0x928   :  { %v2618_v52 = vpop.f32.mrb[51].mxu0 }
 0x929   :  { %2789 = vmatprep.mubr.bf16.mxu0 %v2621_v8 }
 0x92a   :  { %2790 = vmatmul.mubr.bf16.vlgmr.msra.gmra.mrb[52].mxu0 %v2620_v43 }
 0x92b   :  { %3379 = vmatpush3.bf16.msra.mxu0 %v3677_v1  ;;  %3386 = vmatprep.mubr.msk.bf16.mxu0 %vm3714_vm7, %v3713_v31 }
 0x92c   :  { %3380 = vmatprep.subr.bf16.mxu0 %v3713_v31 }
 0x92f   :  { %3381 = vmatpush3.bf16.msra.mxu0 %v3678_v12 }
 0x930   :  { %3382 = vmatprep.subr.bf16.mxu0 %v3713_v31 }
 0x933   :  { %3383 = vmatpush3.bf16.msra.mxu0 %v3679_v42 }
 0x934   :  { %3384 = vmatprep.subr.bf16.mxu0 %v3713_v31 }
 0x937   :  { %3385 = vmatpush3.bf16.msra.mxu0 %v3680_v61 }
 0x9fd   :  { %v3343_v14 = vpop.f32.mrb[52].mxu0 }
 0x9fe   :  { %v3344_v4 = vpop.f32.mrb[53].mxu0 }
 0x9ff   :  { %v3345_v58 = vadd.f32 %v3344_v4, %v3343_v14  ;;  %v3346_v56 = vpop.f32.mrb[54].mxu0 }
 0xa00   :  { %v3347_v38 = vpop.f32.mrb[55].mxu0 }
 0xa01   :  { %v2792_v11 = vadd.f32 %v3345_v58, %v3124_v27 }
 0xa03   :  { %v2797_v19 = vpack.c.bf16 %v2792_v11, %v2792_v11  ;;  %v2884_v26 = vsel %vm2883_vm8, %v2792_v11, -inf }
 0xa04   :  { %2885 = vmax.xlane.f32.xlu0 %v2884_v26 }
 0xa05   :  { %3387 = vmatmul.mubr.msk.bf16.vlgmr.msra.gmra.mrb[56].mxu0 %vm727_vm6, %v2797_v19 }
 0xa91   :  { %v2886_v9 = vpop.xlane.xlu0 %2885 }
 0xa92   :  { %v2887_v23 = vsub.f32 %v2792_v11, %v2886_v9 }
 0xa94   :  { %v2888_v63 = vmul.f32 1.442695, %v2887_v23 }
 0xa96   :  { %3681 = vpow2.f32 %v2888_v63 }
 0xaa0   :  { %v3682_v24 = vpop.eup %3681 }
 0xaa1   :  { %2891 = vrot.lane.b32.xlu1 %v3682_v24, %s3712_s0 }
 0xad8   :  { %v2874_v21 = vpop.f32.mrb[56].mxu0 }
 0xad9   :  { %v2875_v10 = vadd.f32 %v3141_v29, %v2874_v21  ;;  %v3388_v41 = vpop.f32.mrb[57].mxu0 }
 0xada   :  { %v2877_v3 = vpop.f32.mrb[58].mxu0 }
 0xadb   :  { %3683 = vtanh.f32 %v2875_v10  ;;  %v3389_v46 = vpop.f32.mrb[59].mxu0 }
 0xae5   :  { %v3684_v48 = vpop.eup %3683 }
 0xae6   :  { %2882 = vst.msk [vmem:[%s5061_s25] sm:$0x3] %vm2881_vm9, %v3684_v48 }
 0xb13   :  { %v2892_v62 = vpop.permute.xlu1 %2891 }
 0xb14   :  { %v2895_v15 = vsel %vm2894_vm10, %v2892_v62, 0.0 }
 0xb15   :  { %2896 = vadd.xlane.f32.xlu1 %v2895_v15 }
 0xba2   :  { %v2897_v44 = vpop.xlane.xlu1 %2896 }
 0xba3   :  { %3685 = vrcp.f32 %v2897_v44 }
 0xbad   :  { %v3686_v6 = vpop.eup %3685 }
 0xbae   :  { %v2899_v55 = vmul.f32 %v3686_v6, %v3682_v24 }
 0xbb0   :  { %2901 = vrot.lane.b32.xlu0 %v2899_v55, %s3712_s0 }
 0xc22   :  { %v2902_v51 = vpop.permute.xlu0 %2901 }
 0xc23   :  { %2904 = vst.msk [vmem:[#allocation3] sm:$0x3] %vm2894_vm10, %v2902_v51 }
 0xc24   :  { %3698 = shalt.err (!%p3695_p4)
}
 0xc25   :  { %s3699_s12 = scalar_lea.hbm %s5060_s24, 32 }
 0xc26   :  { %p3700_p5 = scmp.ne.s32.totalorder %s5060_s24, %s3699_s12  ;;  %p3703_p6 = scmp.lt.u32.totalorder %s3699_s12, %s5060_s24 }
 0xc28   :  { %p3705_p7 = pnand %p3703_p6, %p3700_p5 }
 0xc2a   :  { %3708 = shalt.err (!%p3705_p7)
}
 0xc2b   :  { %2914 = dma.vmem_to_hbm [thread:$0]  %s2912_s6, 32, %s5060_s24, [#allocation4]  }
 0xc2c   :  { %3709 = dma.done.wait [#allocation4], 32  }
 0xc2d   :  { %3710 = vsyncadd [#allocation4], 4294967264 }
 0xc2e   :  { %2922 = vsyncpa [#allocation4], 1 }

</bundles_post_ra>
